<compile_context>
chip_gen: v7x
topology: tpu7x:2x2x1
jax: 0.10.0
libtpu: 0.0.40
codegen_flags: <defaults>
</compile_context>

<pallas_src>
import math
import jax
import jax.numpy as jnp
from jax.experimental import pallas as pl
from jax.experimental.pallas import tpu as pltpu


# ---------------------------- fused forward kernel ----------------------------
def _fused_gru_kernel(emb_ref, wih0_ref, bih0_ref, whh0_ref, bhhn0_ref,
                      wih1_ref, bih1_ref, whh1_ref, bhhn1_ref, wcls_ref,
                      out_ref):
    N = emb_ref.shape[0]               # N = T*B rows, time-major (t, b) order
    H2, W3 = whh0_ref.shape            # 2H, 3*P
    H = H2 // 2
    P = W3 // 3                        # lane-aligned per-gate block stride (>=128)
    B = out_ref.shape[0]
    T = N // B

    # lane masks: within each 128-lane gate block, cols [0:H] = fwd, [H:2H] = bwd
    lane3 = jax.lax.broadcasted_iota(jnp.int32, (B, W3), 1)
    fwd_mask3 = (lane3 % P) < H
    lane2 = jax.lax.broadcasted_iota(jnp.int32, (B, H2), 1)
    fwd_mask2 = lane2 < H

    def run_layer(gi, whh, bhh_bc):
        # gi: (N, W3) hoisted input projection; b_ih and the r/z halves of b_hh
        # are already folded in.  Column layout per gate g in {r,z,n}:
        #   cols [g*P : g*P+H]   = fwd gate g
        #   cols [g*P+H : g*P+2H]= bwd gate g
        rows = [gi[s * B:(s + 1) * B, :] for s in range(T)]
        # step s consumes fwd gates of time s and bwd gates of time T-1-s
        sched = [jnp.where(fwd_mask3, rows[s], rows[T - 1 - s]) for s in range(T)]

        h = jnp.zeros((B, H2), jnp.float32)          # [h_fwd | h_bwd]
        outs = []
        for s in range(T):
            gh = jnp.dot(h, whh, preferred_element_type=jnp.float32) + bhh_bc
            # one sigmoid over the contiguous r|z blocks (both directions)
            rz = jax.nn.sigmoid(sched[s][:, 0:2 * P] + gh[:, 0:2 * P])
            r = rz[:, 0:H2]
            z = rz[:, P:P + H2]
            n = jnp.tanh(sched[s][:, 2 * P:2 * P + H2]
                         + r * gh[:, 2 * P:2 * P + H2])
            h = (1.0 - z) * n + z * h
            outs.append(h)
        return outs

    # ---- layer 0: hoisted input projection (fwd+bwd in one matmul) ----
    gi0 = jnp.dot(emb_ref[...], wih0_ref[...],
                  preferred_element_type=jnp.float32) + bih0_ref[...]
    bhh0_bc = jnp.broadcast_to(bhhn0_ref[...], (B, W3))
    outs0 = run_layer(gi0, whh0_ref[...], bhh0_bc)

    # TODO(synk): nn.GRU applies dropout(p=0.5) between layers only in training
    #             mode; eval-mode (no dropout) semantics are implemented here.

    # ---- layer 1 input: re-align bwd outputs to time order via lane selects ----
    # outs0[s] = [h0_f(s) | h0_b(T-1-s)]  ->  x1[t] = [h0_f(t) | h0_b(t)]
    x1 = jnp.concatenate(
        [jnp.where(fwd_mask2, outs0[t], outs0[T - 1 - t]) for t in range(T)],
        axis=0)                                           # (N, 2H)
    gi1 = jnp.dot(x1, wih1_ref[...],
                  preferred_element_type=jnp.float32) + bih1_ref[...]
    bhh1_bc = jnp.broadcast_to(bhhn1_ref[...], (B, W3))
    outs1 = run_layer(gi1, whh1_ref[...], bhh1_bc)

    # ---- head: sum over steps covers both directions over all times ----
    acc = outs1[0]
    for s in range(1, T):
        acc = acc + outs1[s]
    # classifier weight is duplicated over the fwd/bwd halves and pre-scaled by
    # 1/T, so this single dot implements mean_t(h1_f + h1_b) @ W_cls^T.
    out_ref[...] = jnp.dot(acc, wcls_ref[...], preferred_element_type=jnp.float32)


# ---------------------------- weight packing helpers ----------------------------
def _pack_ih(w_f, w_b, H, P):
    """(3H, Din) fwd/bwd -> (Din, 3P): gate blocks at 128-lane offsets,
    fwd sub-block at lane 0, bwd sub-block at lane H."""
    Din = w_f.shape[1]
    out = jnp.zeros((Din, 3 * P), jnp.float32)
    for g in range(3):
        out = out.at[:, g * P:g * P + H].set(
            w_f[g * H:(g + 1) * H, :].T.astype(jnp.float32))
        out = out.at[:, g * P + H:g * P + 2 * H].set(
            w_b[g * H:(g + 1) * H, :].T.astype(jnp.float32))
    return out


def _pack_hh(w_f, w_b, H, P):
    """(3H, H) fwd/bwd -> block-diagonal (2H, 3P) so [h_f | h_b] @ W yields
    both directions' gate pre-activations in one matmul."""
    out = jnp.zeros((2 * H, 3 * P), jnp.float32)
    for g in range(3):
        out = out.at[0:H, g * P:g * P + H].set(
            w_f[g * H:(g + 1) * H, :].T.astype(jnp.float32))
        out = out.at[H:2 * H, g * P + H:g * P + 2 * H].set(
            w_b[g * H:(g + 1) * H, :].T.astype(jnp.float32))
    return out


def _pack_bias(b_f, b_b, H, P, gates):
    out = jnp.zeros((1, 3 * P), jnp.float32)
    for g in gates:
        out = out.at[0, g * P:g * P + H].set(b_f[g * H:(g + 1) * H].astype(jnp.float32))
        out = out.at[0, g * P + H:g * P + 2 * H].set(b_b[g * H:(g + 1) * H].astype(jnp.float32))
    return out


# ---------------------------- wrapper ----------------------------
def model_forward(params, x):
    B, W = x.shape
    T = W

    # ---- compositional embedding ('cwc', weighted), precomputed as a table ----
    code = params["code"].astype(jnp.float32)                   # (V, C, K)
    sm = jax.nn.softmax(code, axis=-2)                          # softmax over codebook axis (dim=-2)
    emb_table = jnp.einsum('vck,cke->ve', sm,
                           params["codebook"].astype(jnp.float32))   # (V, E)
    emb = jnp.take(emb_table, x.reshape(-1), axis=0).reshape(B, W, -1)
    E = emb.shape[-1]
    emb_tm = jnp.transpose(emb, (1, 0, 2)).reshape(T * B, E)    # time-major rows

    g = params["gru"]
    wih0f, whh0f, bih0f, bhh0f = g["l0_fwd"]
    wih0b, whh0b, bih0b, bhh0b = g["l0_bwd"]
    wih1f, whh1f, bih1f, bhh1f = g["l1_fwd"]
    wih1b, whh1b, bih1b, bhh1b = g["l1_bwd"]
    H = whh0f.shape[1]
    P = ((2 * H + 127) // 128) * 128
    W3 = 3 * P

    wih0 = _pack_ih(wih0f, wih0b, H, P)
    wih1 = _pack_ih(wih1f, wih1b, H, P)
    whh0 = _pack_hh(whh0f, whh0b, H, P)
    whh1 = _pack_hh(whh1f, whh1b, H, P)
    # fold b_ih plus the r/z halves of b_hh into the hoisted projection bias;
    # b_hn must stay inside r*(W_hn h + b_hn) -> separate n-only bias.
    bih0 = _pack_bias(bih0f, bih0b, H, P, (0, 1, 2)) + _pack_bias(bhh0f, bhh0b, H, P, (0, 1))
    bih1 = _pack_bias(bih1f, bih1b, H, P, (0, 1, 2)) + _pack_bias(bhh1f, bhh1b, H, P, (0, 1))
    bhhn0 = _pack_bias(bhh0f, bhh0b, H, P, (2,))
    bhhn1 = _pack_bias(bhh1f, bhh1b, H, P, (2,))

    num_class = params["w_cls"].shape[0]
    NC = ((num_class + 127) // 128) * 128                       # lane-dense output
    wt = (params["w_cls"].T / T).astype(jnp.float32)            # fold 1/T mean into weight
    wcls = jnp.zeros((2 * H, NC), jnp.float32)
    wcls = wcls.at[0:H, 0:num_class].set(wt)
    wcls = wcls.at[H:2 * H, 0:num_class].set(wt)                # shared weight: fwd + bwd

    flops = 2 * (T * B * E * W3 + T * B * 2 * H * W3
                 + 2 * T * B * 2 * H * W3 + B * 2 * H * NC)
    trans = 2 * T * B * (2 * P + 2 * H)
    bytes_acc = 4 * (T * B * E + E * W3 + 3 * (2 * H) * W3 + 4 * W3
                     + 2 * H * NC + B * NC)

    out_pad = pl.pallas_call(
        _fused_gru_kernel,
        out_shape=jax.ShapeDtypeStruct((B, NC), jnp.float32),
        cost_estimate=pl.CostEstimate(flops=flops, transcendentals=trans,
                                      bytes_accessed=bytes_acc),
    )(emb_tm, wih0, bih0, whh0, bhhn0, wih1, bih1, whh1, bhhn1, wcls)

    return out_pad[:, :num_class]


# ---------------------------- deterministic parameters ----------------------------
def init_params(key, vocab_size, embedding_size, num_codebook, num_codeword,
                hidden_size, num_class):
    ks = jax.random.split(key, 20)
    H, E = hidden_size, embedding_size
    scale = 1.0 / math.sqrt(H)

    def gru_dir(k, din):
        k1, k2, k3, k4 = jax.random.split(k, 4)
        return (
            jax.random.uniform(k1, (3 * H, din), jnp.float32, -scale, scale),  # w_ih
            jax.random.uniform(k2, (3 * H, H), jnp.float32, -scale, scale),    # w_hh
            jax.random.uniform(k3, (3 * H,), jnp.float32, -scale, scale),      # b_ih
            jax.random.uniform(k4, (3 * H,), jnp.float32, -scale, scale),      # b_hh
        )

    return {
        "code": jax.random.normal(ks[0], (vocab_size, num_codebook, num_codeword),
                                  jnp.float32),
        "codebook": jax.random.normal(ks[1], (num_codebook, num_codeword, E),
                                      jnp.float32),
        "gru": {
            "l0_fwd": gru_dir(ks[2], E),
            "l0_bwd": gru_dir(ks[3], E),
            "l1_fwd": gru_dir(ks[4], 2 * H),
            "l1_bwd": gru_dir(ks[5], 2 * H),
        },
        "w_cls": jax.random.uniform(ks[6], (num_class, H), jnp.float32,
                                    -scale, scale),
    }


if __name__ == "__main__":
    vocab_size, embedding_size = 50, 32
    num_codebook, num_codeword = 4, 8
    hidden_size, num_class = 32, 5
    B, W = 2, 8  # batch, sequence length

    key = jax.random.PRNGKey(0)
    kp, kx = jax.random.split(key)
    params = init_params(kp, vocab_size, embedding_size, num_codebook,
                         num_codeword, hidden_size, num_class)
    x = jax.random.randint(kx, (B, W), 0, vocab_size, dtype=jnp.int32)

    fwd = jax.jit(model_forward)
    out = jax.block_until_ready(fwd(params, x))
    assert out.shape == (B, num_class), out.shape
    assert out.dtype == jnp.float32
    assert bool(jnp.all(jnp.isfinite(out)))
    print("KERNEL_OK")
</pallas_src>

<mosaic_0001>
module attributes {stable_mosaic.version = 11 : i64} {
  func.func @_fused_gru_kernel(%arg0: memref<16x32xf32, #tpu.memory_space<vmem>>, %arg1: memref<32x384xf32, #tpu.memory_space<vmem>>, %arg2: memref<1x384xf32, #tpu.memory_space<vmem>>, %arg3: memref<64x384xf32, #tpu.memory_space<vmem>>, %arg4: memref<1x384xf32, #tpu.memory_space<vmem>>, %arg5: memref<64x384xf32, #tpu.memory_space<vmem>>, %arg6: memref<1x384xf32, #tpu.memory_space<vmem>>, %arg7: memref<64x384xf32, #tpu.memory_space<vmem>>, %arg8: memref<1x384xf32, #tpu.memory_space<vmem>>, %arg9: memref<64x128xf32, #tpu.memory_space<vmem>>, %arg10: memref<2x128xf32, #tpu.memory_space<vmem>>) attributes {dimension_semantics = [], scalar_prefetch = 0 : i64, scratch_operands = 0 : i64, tpu.core_type = #tpu.core_type<tc>} {
    %0 = tpu.iota {dimensions = array<i32: 1>} : vector<2x384xi32>
    %c128_i32 = arith.constant 128 : i32
    %c0_i32 = arith.constant 0 : i32
    %1 = arith.cmpi eq, %c128_i32, %c0_i32 : i32
    %c1_i32 = arith.constant 1 : i32
    %2 = arith.select %1, %c1_i32, %c128_i32 : i32
    %3 = vector.broadcast %2 : i32 to vector<2x384xi32>
    %4 = arith.remsi %0, %3 : vector<2x384xi32>
    %c0_i32_0 = arith.constant 0 : i32
    %5 = vector.broadcast %c0_i32_0 : i32 to vector<2x384xi32>
    %6 = arith.cmpi ne, %4, %5 : vector<2x384xi32>
    %c0_i32_1 = arith.constant 0 : i32
    %7 = vector.broadcast %c0_i32_1 : i32 to vector<2x384xi32>
    %8 = arith.cmpi slt, %4, %7 : vector<2x384xi32>
    %c0_i32_2 = arith.constant 0 : i32
    %9 = arith.cmpi slt, %2, %c0_i32_2 : i32
    %10 = vector.broadcast %9 : i1 to vector<2x384xi1>
    %11 = vector.broadcast %10 : vector<2x384xi1> to vector<2x384xi1>
    %12 = arith.xori %8, %11 : vector<2x384xi1>
    %13 = arith.andi %12, %6 : vector<2x384xi1>
    %14 = vector.broadcast %2 : i32 to vector<2x384xi32>
    %15 = arith.addi %4, %14 : vector<2x384xi32>
    %16 = arith.select %13, %15, %4 : vector<2x384xi1>, vector<2x384xi32>
    %c32_i32 = arith.constant 32 : i32
    %17 = vector.broadcast %c32_i32 : i32 to vector<2x384xi32>
    %18 = arith.cmpi slt, %16, %17 : vector<2x384xi32>
    %19 = tpu.iota {dimensions = array<i32: 1>} : vector<2x64xi32>
    %c32_i32_3 = arith.constant 32 : i32
    %20 = vector.broadcast %c32_i32_3 : i32 to vector<2x64xi32>
    %21 = arith.cmpi slt, %19, %20 : vector<2x64xi32>
    %c0 = arith.constant 0 : index
    %c0_4 = arith.constant 0 : index
    %22 = vector.load %arg0[%c0, %c0_4] : memref<16x32xf32, #tpu.memory_space<vmem>>, vector<16x32xf32>
    %c0_5 = arith.constant 0 : index
    %c0_6 = arith.constant 0 : index
    %23 = vector.load %arg1[%c0_5, %c0_6] : memref<32x384xf32, #tpu.memory_space<vmem>>, vector<32x384xf32>
    %cst = arith.constant dense<0.000000e+00> : vector<16x384xf32>
    %24 = tpu.matmul %22, %23, %cst {dimension_numbers = #tpu.dot_dimension_numbers<[1], [0], [0], [1], [0, 0, 1, 1], [], []>} : vector<16x32xf32>, vector<32x384xf32>, vector<16x384xf32> -> vector<16x384xf32>
    %c0_7 = arith.constant 0 : index
    %c0_8 = arith.constant 0 : index
    %25 = vector.load %arg2[%c0_7, %c0_8] : memref<1x384xf32, #tpu.memory_space<vmem>>, vector<1x384xf32>
    %26 = vector.broadcast %25 : vector<1x384xf32> to vector<16x384xf32>
    %27 = arith.addf %24, %26 : vector<16x384xf32>
    %c0_9 = arith.constant 0 : index
    %c0_10 = arith.constant 0 : index
    %28 = vector.load %arg4[%c0_9, %c0_10] : memref<1x384xf32, #tpu.memory_space<vmem>>, vector<1x384xf32>
    %29 = vector.shape_cast %28 : vector<1x384xf32> to vector<1x384xf32>
    %30 = vector.broadcast %29 : vector<1x384xf32> to vector<2x384xf32>
    %c0_11 = arith.constant 0 : index
    %c0_12 = arith.constant 0 : index
    %31 = vector.load %arg3[%c0_11, %c0_12] : memref<64x384xf32, #tpu.memory_space<vmem>>, vector<64x384xf32>
    %32 = vector.extract_strided_slice %27 {offsets = [0, 0], sizes = [2, 384], strides = [1, 1]} : vector<16x384xf32> to vector<2x384xf32>
    %33 = vector.extract_strided_slice %27 {offsets = [2, 0], sizes = [2, 384], strides = [1, 1]} : vector<16x384xf32> to vector<2x384xf32>
    %34 = vector.extract_strided_slice %27 {offsets = [4, 0], sizes = [2, 384], strides = [1, 1]} : vector<16x384xf32> to vector<2x384xf32>
    %35 = vector.extract_strided_slice %27 {offsets = [6, 0], sizes = [2, 384], strides = [1, 1]} : vector<16x384xf32> to vector<2x384xf32>
    %36 = vector.extract_strided_slice %27 {offsets = [8, 0], sizes = [2, 384], strides = [1, 1]} : vector<16x384xf32> to vector<2x384xf32>
    %37 = vector.extract_strided_slice %27 {offsets = [10, 0], sizes = [2, 384], strides = [1, 1]} : vector<16x384xf32> to vector<2x384xf32>
    %38 = vector.extract_strided_slice %27 {offsets = [12, 0], sizes = [2, 384], strides = [1, 1]} : vector<16x384xf32> to vector<2x384xf32>
    %39 = vector.extract_strided_slice %27 {offsets = [14, 0], sizes = [2, 384], strides = [1, 1]} : vector<16x384xf32> to vector<2x384xf32>
    %40 = arith.select %18, %32, %39 : vector<2x384xi1>, vector<2x384xf32>
    %41 = arith.select %18, %33, %38 : vector<2x384xi1>, vector<2x384xf32>
    %42 = arith.select %18, %34, %37 : vector<2x384xi1>, vector<2x384xf32>
    %43 = arith.select %18, %35, %36 : vector<2x384xi1>, vector<2x384xf32>
    %44 = arith.select %18, %36, %35 : vector<2x384xi1>, vector<2x384xf32>
    %45 = arith.select %18, %37, %34 : vector<2x384xi1>, vector<2x384xf32>
    %46 = arith.select %18, %38, %33 : vector<2x384xi1>, vector<2x384xf32>
    %47 = arith.select %18, %39, %32 : vector<2x384xi1>, vector<2x384xf32>
    %cst_13 = arith.constant 0.000000e+00 : f32
    %48 = vector.broadcast %cst_13 : f32 to vector<2x64xf32>
    %cst_14 = arith.constant dense<0.000000e+00> : vector<2x384xf32>
    %49 = tpu.matmul %48, %31, %cst_14 {dimension_numbers = #tpu.dot_dimension_numbers<[1], [0], [0], [1], [0, 0, 1, 1], [], []>} : vector<2x64xf32>, vector<64x384xf32>, vector<2x384xf32> -> vector<2x384xf32>
    %50 = arith.addf %49, %30 : vector<2x384xf32>
    %51 = vector.extract_strided_slice %40 {offsets = [0, 0], sizes = [2, 256], strides = [1, 1]} : vector<2x384xf32> to vector<2x256xf32>
    %52 = vector.extract_strided_slice %50 {offsets = [0, 0], sizes = [2, 256], strides = [1, 1]} : vector<2x384xf32> to vector<2x256xf32>
    %53 = arith.addf %51, %52 : vector<2x256xf32>
    %54 = arith.negf %53 : vector<2x256xf32>
    %55 = math.exp %54 : vector<2x256xf32>
    %cst_15 = arith.constant 1.000000e+00 : f32
    %56 = vector.broadcast %cst_15 : f32 to vector<2x256xf32>
    %57 = arith.addf %56, %55 : vector<2x256xf32>
    %58 = arith.divf %56, %57 : vector<2x256xf32>
    %59 = vector.extract_strided_slice %58 {offsets = [0, 0], sizes = [2, 64], strides = [1, 1]} : vector<2x256xf32> to vector<2x64xf32>
    %60 = vector.extract_strided_slice %58 {offsets = [0, 128], sizes = [2, 64], strides = [1, 1]} : vector<2x256xf32> to vector<2x64xf32>
    %61 = vector.extract_strided_slice %40 {offsets = [0, 256], sizes = [2, 64], strides = [1, 1]} : vector<2x384xf32> to vector<2x64xf32>
    %62 = vector.extract_strided_slice %50 {offsets = [0, 256], sizes = [2, 64], strides = [1, 1]} : vector<2x384xf32> to vector<2x64xf32>
    %63 = arith.mulf %59, %62 : vector<2x64xf32>
    %64 = arith.addf %61, %63 : vector<2x64xf32>
    %65 = math.tanh %64 : vector<2x64xf32>
    %cst_16 = arith.constant 1.000000e+00 : f32
    %66 = vector.broadcast %cst_16 : f32 to vector<2x64xf32>
    %67 = arith.subf %66, %60 : vector<2x64xf32>
    %68 = arith.mulf %67, %65 : vector<2x64xf32>
    %69 = arith.mulf %60, %48 : vector<2x64xf32>
    %70 = arith.addf %68, %69 : vector<2x64xf32>
    %cst_17 = arith.constant dense<0.000000e+00> : vector<2x384xf32>
    %71 = tpu.matmul %70, %31, %cst_17 {dimension_numbers = #tpu.dot_dimension_numbers<[1], [0], [0], [1], [0, 0, 1, 1], [], []>} : vector<2x64xf32>, vector<64x384xf32>, vector<2x384xf32> -> vector<2x384xf32>
    %72 = arith.addf %71, %30 : vector<2x384xf32>
    %73 = vector.extract_strided_slice %41 {offsets = [0, 0], sizes = [2, 256], strides = [1, 1]} : vector<2x384xf32> to vector<2x256xf32>
    %74 = vector.extract_strided_slice %72 {offsets = [0, 0], sizes = [2, 256], strides = [1, 1]} : vector<2x384xf32> to vector<2x256xf32>
    %75 = arith.addf %73, %74 : vector<2x256xf32>
    %76 = arith.negf %75 : vector<2x256xf32>
    %77 = math.exp %76 : vector<2x256xf32>
    %cst_18 = arith.constant 1.000000e+00 : f32
    %78 = vector.broadcast %cst_18 : f32 to vector<2x256xf32>
    %79 = arith.addf %78, %77 : vector<2x256xf32>
    %80 = arith.divf %78, %79 : vector<2x256xf32>
    %81 = vector.extract_strided_slice %80 {offsets = [0, 0], sizes = [2, 64], strides = [1, 1]} : vector<2x256xf32> to vector<2x64xf32>
    %82 = vector.extract_strided_slice %80 {offsets = [0, 128], sizes = [2, 64], strides = [1, 1]} : vector<2x256xf32> to vector<2x64xf32>
    %83 = vector.extract_strided_slice %41 {offsets = [0, 256], sizes = [2, 64], strides = [1, 1]} : vector<2x384xf32> to vector<2x64xf32>
    %84 = vector.extract_strided_slice %72 {offsets = [0, 256], sizes = [2, 64], strides = [1, 1]} : vector<2x384xf32> to vector<2x64xf32>
    %85 = arith.mulf %81, %84 : vector<2x64xf32>
    %86 = arith.addf %83, %85 : vector<2x64xf32>
    %87 = math.tanh %86 : vector<2x64xf32>
    %cst_19 = arith.constant 1.000000e+00 : f32
    %88 = vector.broadcast %cst_19 : f32 to vector<2x64xf32>
    %89 = arith.subf %88, %82 : vector<2x64xf32>
    %90 = arith.mulf %89, %87 : vector<2x64xf32>
    %91 = arith.mulf %82, %70 : vector<2x64xf32>
    %92 = arith.addf %90, %91 : vector<2x64xf32>
    %cst_20 = arith.constant dense<0.000000e+00> : vector<2x384xf32>
    %93 = tpu.matmul %92, %31, %cst_20 {dimension_numbers = #tpu.dot_dimension_numbers<[1], [0], [0], [1], [0, 0, 1, 1], [], []>} : vector<2x64xf32>, vector<64x384xf32>, vector<2x384xf32> -> vector<2x384xf32>
    %94 = arith.addf %93, %30 : vector<2x384xf32>
    %95 = vector.extract_strided_slice %42 {offsets = [0, 0], sizes = [2, 256], strides = [1, 1]} : vector<2x384xf32> to vector<2x256xf32>
    %96 = vector.extract_strided_slice %94 {offsets = [0, 0], sizes = [2, 256], strides = [1, 1]} : vector<2x384xf32> to vector<2x256xf32>
    %97 = arith.addf %95, %96 : vector<2x256xf32>
    %98 = arith.negf %97 : vector<2x256xf32>
    %99 = math.exp %98 : vector<2x256xf32>
    %cst_21 = arith.constant 1.000000e+00 : f32
    %100 = vector.broadcast %cst_21 : f32 to vector<2x256xf32>
    %101 = arith.addf %100, %99 : vector<2x256xf32>
    %102 = arith.divf %100, %101 : vector<2x256xf32>
    %103 = vector.extract_strided_slice %102 {offsets = [0, 0], sizes = [2, 64], strides = [1, 1]} : vector<2x256xf32> to vector<2x64xf32>
    %104 = vector.extract_strided_slice %102 {offsets = [0, 128], sizes = [2, 64], strides = [1, 1]} : vector<2x256xf32> to vector<2x64xf32>
    %105 = vector.extract_strided_slice %42 {offsets = [0, 256], sizes = [2, 64], strides = [1, 1]} : vector<2x384xf32> to vector<2x64xf32>
    %106 = vector.extract_strided_slice %94 {offsets = [0, 256], sizes = [2, 64], strides = [1, 1]} : vector<2x384xf32> to vector<2x64xf32>
    %107 = arith.mulf %103, %106 : vector<2x64xf32>
    %108 = arith.addf %105, %107 : vector<2x64xf32>
    %109 = math.tanh %108 : vector<2x64xf32>
    %cst_22 = arith.constant 1.000000e+00 : f32
    %110 = vector.broadcast %cst_22 : f32 to vector<2x64xf32>
    %111 = arith.subf %110, %104 : vector<2x64xf32>
    %112 = arith.mulf %111, %109 : vector<2x64xf32>
    %113 = arith.mulf %104, %92 : vector<2x64xf32>
    %114 = arith.addf %112, %113 : vector<2x64xf32>
    %cst_23 = arith.constant dense<0.000000e+00> : vector<2x384xf32>
    %115 = tpu.matmul %114, %31, %cst_23 {dimension_numbers = #tpu.dot_dimension_numbers<[1], [0], [0], [1], [0, 0, 1, 1], [], []>} : vector<2x64xf32>, vector<64x384xf32>, vector<2x384xf32> -> vector<2x384xf32>
    %116 = arith.addf %115, %30 : vector<2x384xf32>
    %117 = vector.extract_strided_slice %43 {offsets = [0, 0], sizes = [2, 256], strides = [1, 1]} : vector<2x384xf32> to vector<2x256xf32>
    %118 = vector.extract_strided_slice %116 {offsets = [0, 0], sizes = [2, 256], strides = [1, 1]} : vector<2x384xf32> to vector<2x256xf32>
    %119 = arith.addf %117, %118 : vector<2x256xf32>
    %120 = arith.negf %119 : vector<2x256xf32>
    %121 = math.exp %120 : vector<2x256xf32>
    %cst_24 = arith.constant 1.000000e+00 : f32
    %122 = vector.broadcast %cst_24 : f32 to vector<2x256xf32>
    %123 = arith.addf %122, %121 : vector<2x256xf32>
    %124 = arith.divf %122, %123 : vector<2x256xf32>
    %125 = vector.extract_strided_slice %124 {offsets = [0, 0], sizes = [2, 64], strides = [1, 1]} : vector<2x256xf32> to vector<2x64xf32>
    %126 = vector.extract_strided_slice %124 {offsets = [0, 128], sizes = [2, 64], strides = [1, 1]} : vector<2x256xf32> to vector<2x64xf32>
    %127 = vector.extract_strided_slice %43 {offsets = [0, 256], sizes = [2, 64], strides = [1, 1]} : vector<2x384xf32> to vector<2x64xf32>
    %128 = vector.extract_strided_slice %116 {offsets = [0, 256], sizes = [2, 64], strides = [1, 1]} : vector<2x384xf32> to vector<2x64xf32>
    %129 = arith.mulf %125, %128 : vector<2x64xf32>
    %130 = arith.addf %127, %129 : vector<2x64xf32>
    %131 = math.tanh %130 : vector<2x64xf32>
    %cst_25 = arith.constant 1.000000e+00 : f32
    %132 = vector.broadcast %cst_25 : f32 to vector<2x64xf32>
    %133 = arith.subf %132, %126 : vector<2x64xf32>
    %134 = arith.mulf %133, %131 : vector<2x64xf32>
    %135 = arith.mulf %126, %114 : vector<2x64xf32>
    %136 = arith.addf %134, %135 : vector<2x64xf32>
    %cst_26 = arith.constant dense<0.000000e+00> : vector<2x384xf32>
    %137 = tpu.matmul %136, %31, %cst_26 {dimension_numbers = #tpu.dot_dimension_numbers<[1], [0], [0], [1], [0, 0, 1, 1], [], []>} : vector<2x64xf32>, vector<64x384xf32>, vector<2x384xf32> -> vector<2x384xf32>
    %138 = arith.addf %137, %30 : vector<2x384xf32>
    %139 = vector.extract_strided_slice %44 {offsets = [0, 0], sizes = [2, 256], strides = [1, 1]} : vector<2x384xf32> to vector<2x256xf32>
    %140 = vector.extract_strided_slice %138 {offsets = [0, 0], sizes = [2, 256], strides = [1, 1]} : vector<2x384xf32> to vector<2x256xf32>
    %141 = arith.addf %139, %140 : vector<2x256xf32>
    %142 = arith.negf %141 : vector<2x256xf32>
    %143 = math.exp %142 : vector<2x256xf32>
    %cst_27 = arith.constant 1.000000e+00 : f32
    %144 = vector.broadcast %cst_27 : f32 to vector<2x256xf32>
    %145 = arith.addf %144, %143 : vector<2x256xf32>
    %146 = arith.divf %144, %145 : vector<2x256xf32>
    %147 = vector.extract_strided_slice %146 {offsets = [0, 0], sizes = [2, 64], strides = [1, 1]} : vector<2x256xf32> to vector<2x64xf32>
    %148 = vector.extract_strided_slice %146 {offsets = [0, 128], sizes = [2, 64], strides = [1, 1]} : vector<2x256xf32> to vector<2x64xf32>
    %149 = vector.extract_strided_slice %44 {offsets = [0, 256], sizes = [2, 64], strides = [1, 1]} : vector<2x384xf32> to vector<2x64xf32>
    %150 = vector.extract_strided_slice %138 {offsets = [0, 256], sizes = [2, 64], strides = [1, 1]} : vector<2x384xf32> to vector<2x64xf32>
    %151 = arith.mulf %147, %150 : vector<2x64xf32>
    %152 = arith.addf %149, %151 : vector<2x64xf32>
    %153 = math.tanh %152 : vector<2x64xf32>
    %cst_28 = arith.constant 1.000000e+00 : f32
    %154 = vector.broadcast %cst_28 : f32 to vector<2x64xf32>
    %155 = arith.subf %154, %148 : vector<2x64xf32>
    %156 = arith.mulf %155, %153 : vector<2x64xf32>
    %157 = arith.mulf %148, %136 : vector<2x64xf32>
    %158 = arith.addf %156, %157 : vector<2x64xf32>
    %cst_29 = arith.constant dense<0.000000e+00> : vector<2x384xf32>
    %159 = tpu.matmul %158, %31, %cst_29 {dimension_numbers = #tpu.dot_dimension_numbers<[1], [0], [0], [1], [0, 0, 1, 1], [], []>} : vector<2x64xf32>, vector<64x384xf32>, vector<2x384xf32> -> vector<2x384xf32>
    %160 = arith.addf %159, %30 : vector<2x384xf32>
    %161 = vector.extract_strided_slice %45 {offsets = [0, 0], sizes = [2, 256], strides = [1, 1]} : vector<2x384xf32> to vector<2x256xf32>
    %162 = vector.extract_strided_slice %160 {offsets = [0, 0], sizes = [2, 256], strides = [1, 1]} : vector<2x384xf32> to vector<2x256xf32>
    %163 = arith.addf %161, %162 : vector<2x256xf32>
    %164 = arith.negf %163 : vector<2x256xf32>
    %165 = math.exp %164 : vector<2x256xf32>
    %cst_30 = arith.constant 1.000000e+00 : f32
    %166 = vector.broadcast %cst_30 : f32 to vector<2x256xf32>
    %167 = arith.addf %166, %165 : vector<2x256xf32>
    %168 = arith.divf %166, %167 : vector<2x256xf32>
    %169 = vector.extract_strided_slice %168 {offsets = [0, 0], sizes = [2, 64], strides = [1, 1]} : vector<2x256xf32> to vector<2x64xf32>
    %170 = vector.extract_strided_slice %168 {offsets = [0, 128], sizes = [2, 64], strides = [1, 1]} : vector<2x256xf32> to vector<2x64xf32>
    %171 = vector.extract_strided_slice %45 {offsets = [0, 256], sizes = [2, 64], strides = [1, 1]} : vector<2x384xf32> to vector<2x64xf32>
    %172 = vector.extract_strided_slice %160 {offsets = [0, 256], sizes = [2, 64], strides = [1, 1]} : vector<2x384xf32> to vector<2x64xf32>
    %173 = arith.mulf %169, %172 : vector<2x64xf32>
    %174 = arith.addf %171, %173 : vector<2x64xf32>
    %175 = math.tanh %174 : vector<2x64xf32>
    %cst_31 = arith.constant 1.000000e+00 : f32
    %176 = vector.broadcast %cst_31 : f32 to vector<2x64xf32>
    %177 = arith.subf %176, %170 : vector<2x64xf32>
    %178 = arith.mulf %177, %175 : vector<2x64xf32>
    %179 = arith.mulf %170, %158 : vector<2x64xf32>
    %180 = arith.addf %178, %179 : vector<2x64xf32>
    %cst_32 = arith.constant dense<0.000000e+00> : vector<2x384xf32>
    %181 = tpu.matmul %180, %31, %cst_32 {dimension_numbers = #tpu.dot_dimension_numbers<[1], [0], [0], [1], [0, 0, 1, 1], [], []>} : vector<2x64xf32>, vector<64x384xf32>, vector<2x384xf32> -> vector<2x384xf32>
    %182 = arith.addf %181, %30 : vector<2x384xf32>
    %183 = vector.extract_strided_slice %46 {offsets = [0, 0], sizes = [2, 256], strides = [1, 1]} : vector<2x384xf32> to vector<2x256xf32>
    %184 = vector.extract_strided_slice %182 {offsets = [0, 0], sizes = [2, 256], strides = [1, 1]} : vector<2x384xf32> to vector<2x256xf32>
    %185 = arith.addf %183, %184 : vector<2x256xf32>
    %186 = arith.negf %185 : vector<2x256xf32>
    %187 = math.exp %186 : vector<2x256xf32>
    %cst_33 = arith.constant 1.000000e+00 : f32
    %188 = vector.broadcast %cst_33 : f32 to vector<2x256xf32>
    %189 = arith.addf %188, %187 : vector<2x256xf32>
    %190 = arith.divf %188, %189 : vector<2x256xf32>
    %191 = vector.extract_strided_slice %190 {offsets = [0, 0], sizes = [2, 64], strides = [1, 1]} : vector<2x256xf32> to vector<2x64xf32>
    %192 = vector.extract_strided_slice %190 {offsets = [0, 128], sizes = [2, 64], strides = [1, 1]} : vector<2x256xf32> to vector<2x64xf32>
    %193 = vector.extract_strided_slice %46 {offsets = [0, 256], sizes = [2, 64], strides = [1, 1]} : vector<2x384xf32> to vector<2x64xf32>
    %194 = vector.extract_strided_slice %182 {offsets = [0, 256], sizes = [2, 64], strides = [1, 1]} : vector<2x384xf32> to vector<2x64xf32>
    %195 = arith.mulf %191, %194 : vector<2x64xf32>
    %196 = arith.addf %193, %195 : vector<2x64xf32>
    %197 = math.tanh %196 : vector<2x64xf32>
    %cst_34 = arith.constant 1.000000e+00 : f32
    %198 = vector.broadcast %cst_34 : f32 to vector<2x64xf32>
    %199 = arith.subf %198, %192 : vector<2x64xf32>
    %200 = arith.mulf %199, %197 : vector<2x64xf32>
    %201 = arith.mulf %192, %180 : vector<2x64xf32>
    %202 = arith.addf %200, %201 : vector<2x64xf32>
    %cst_35 = arith.constant dense<0.000000e+00> : vector<2x384xf32>
    %203 = tpu.matmul %202, %31, %cst_35 {dimension_numbers = #tpu.dot_dimension_numbers<[1], [0], [0], [1], [0, 0, 1, 1], [], []>} : vector<2x64xf32>, vector<64x384xf32>, vector<2x384xf32> -> vector<2x384xf32>
    %204 = arith.addf %203, %30 : vector<2x384xf32>
    %205 = vector.extract_strided_slice %47 {offsets = [0, 0], sizes = [2, 256], strides = [1, 1]} : vector<2x384xf32> to vector<2x256xf32>
    %206 = vector.extract_strided_slice %204 {offsets = [0, 0], sizes = [2, 256], strides = [1, 1]} : vector<2x384xf32> to vector<2x256xf32>
    %207 = arith.addf %205, %206 : vector<2x256xf32>
    %208 = arith.negf %207 : vector<2x256xf32>
    %209 = math.exp %208 : vector<2x256xf32>
    %cst_36 = arith.constant 1.000000e+00 : f32
    %210 = vector.broadcast %cst_36 : f32 to vector<2x256xf32>
    %211 = arith.addf %210, %209 : vector<2x256xf32>
    %212 = arith.divf %210, %211 : vector<2x256xf32>
    %213 = vector.extract_strided_slice %212 {offsets = [0, 0], sizes = [2, 64], strides = [1, 1]} : vector<2x256xf32> to vector<2x64xf32>
    %214 = vector.extract_strided_slice %212 {offsets = [0, 128], sizes = [2, 64], strides = [1, 1]} : vector<2x256xf32> to vector<2x64xf32>
    %215 = vector.extract_strided_slice %47 {offsets = [0, 256], sizes = [2, 64], strides = [1, 1]} : vector<2x384xf32> to vector<2x64xf32>
    %216 = vector.extract_strided_slice %204 {offsets = [0, 256], sizes = [2, 64], strides = [1, 1]} : vector<2x384xf32> to vector<2x64xf32>
    %217 = arith.mulf %213, %216 : vector<2x64xf32>
    %218 = arith.addf %215, %217 : vector<2x64xf32>
    %219 = math.tanh %218 : vector<2x64xf32>
    %cst_37 = arith.constant 1.000000e+00 : f32
    %220 = vector.broadcast %cst_37 : f32 to vector<2x64xf32>
    %221 = arith.subf %220, %214 : vector<2x64xf32>
    %222 = arith.mulf %221, %219 : vector<2x64xf32>
    %223 = arith.mulf %214, %202 : vector<2x64xf32>
    %224 = arith.addf %222, %223 : vector<2x64xf32>
    %225 = arith.select %21, %70, %224 : vector<2x64xi1>, vector<2x64xf32>
    %226 = arith.select %21, %92, %202 : vector<2x64xi1>, vector<2x64xf32>
    %227 = arith.select %21, %114, %180 : vector<2x64xi1>, vector<2x64xf32>
    %228 = arith.select %21, %136, %158 : vector<2x64xi1>, vector<2x64xf32>
    %229 = arith.select %21, %158, %136 : vector<2x64xi1>, vector<2x64xf32>
    %230 = arith.select %21, %180, %114 : vector<2x64xi1>, vector<2x64xf32>
    %231 = arith.select %21, %202, %92 : vector<2x64xi1>, vector<2x64xf32>
    %232 = arith.select %21, %224, %70 : vector<2x64xi1>, vector<2x64xf32>
    %233 = tpu.concatenate %225, %226, %227, %228, %229, %230, %231, %232 in 0 : vector<2x64xf32>, vector<2x64xf32>, vector<2x64xf32>, vector<2x64xf32>, vector<2x64xf32>, vector<2x64xf32>, vector<2x64xf32>, vector<2x64xf32> -> vector<16x64xf32>
    %c0_38 = arith.constant 0 : index
    %c0_39 = arith.constant 0 : index
    %234 = vector.load %arg5[%c0_38, %c0_39] : memref<64x384xf32, #tpu.memory_space<vmem>>, vector<64x384xf32>
    %cst_40 = arith.constant dense<0.000000e+00> : vector<16x384xf32>
    %235 = tpu.matmul %233, %234, %cst_40 {dimension_numbers = #tpu.dot_dimension_numbers<[1], [0], [0], [1], [0, 0, 1, 1], [], []>} : vector<16x64xf32>, vector<64x384xf32>, vector<16x384xf32> -> vector<16x384xf32>
    %c0_41 = arith.constant 0 : index
    %c0_42 = arith.constant 0 : index
    %236 = vector.load %arg6[%c0_41, %c0_42] : memref<1x384xf32, #tpu.memory_space<vmem>>, vector<1x384xf32>
    %237 = vector.broadcast %236 : vector<1x384xf32> to vector<16x384xf32>
    %238 = arith.addf %235, %237 : vector<16x384xf32>
    %c0_43 = arith.constant 0 : index
    %c0_44 = arith.constant 0 : index
    %239 = vector.load %arg8[%c0_43, %c0_44] : memref<1x384xf32, #tpu.memory_space<vmem>>, vector<1x384xf32>
    %240 = vector.shape_cast %239 : vector<1x384xf32> to vector<1x384xf32>
    %241 = vector.broadcast %240 : vector<1x384xf32> to vector<2x384xf32>
    %c0_45 = arith.constant 0 : index
    %c0_46 = arith.constant 0 : index
    %242 = vector.load %arg7[%c0_45, %c0_46] : memref<64x384xf32, #tpu.memory_space<vmem>>, vector<64x384xf32>
    %243 = vector.extract_strided_slice %238 {offsets = [0, 0], sizes = [2, 384], strides = [1, 1]} : vector<16x384xf32> to vector<2x384xf32>
    %244 = vector.extract_strided_slice %238 {offsets = [2, 0], sizes = [2, 384], strides = [1, 1]} : vector<16x384xf32> to vector<2x384xf32>
    %245 = vector.extract_strided_slice %238 {offsets = [4, 0], sizes = [2, 384], strides = [1, 1]} : vector<16x384xf32> to vector<2x384xf32>
    %246 = vector.extract_strided_slice %238 {offsets = [6, 0], sizes = [2, 384], strides = [1, 1]} : vector<16x384xf32> to vector<2x384xf32>
    %247 = vector.extract_strided_slice %238 {offsets = [8, 0], sizes = [2, 384], strides = [1, 1]} : vector<16x384xf32> to vector<2x384xf32>
    %248 = vector.extract_strided_slice %238 {offsets = [10, 0], sizes = [2, 384], strides = [1, 1]} : vector<16x384xf32> to vector<2x384xf32>
    %249 = vector.extract_strided_slice %238 {offsets = [12, 0], sizes = [2, 384], strides = [1, 1]} : vector<16x384xf32> to vector<2x384xf32>
    %250 = vector.extract_strided_slice %238 {offsets = [14, 0], sizes = [2, 384], strides = [1, 1]} : vector<16x384xf32> to vector<2x384xf32>
    %251 = arith.select %18, %243, %250 : vector<2x384xi1>, vector<2x384xf32>
    %252 = arith.select %18, %244, %249 : vector<2x384xi1>, vector<2x384xf32>
    %253 = arith.select %18, %245, %248 : vector<2x384xi1>, vector<2x384xf32>
    %254 = arith.select %18, %246, %247 : vector<2x384xi1>, vector<2x384xf32>
    %255 = arith.select %18, %247, %246 : vector<2x384xi1>, vector<2x384xf32>
    %256 = arith.select %18, %248, %245 : vector<2x384xi1>, vector<2x384xf32>
    %257 = arith.select %18, %249, %244 : vector<2x384xi1>, vector<2x384xf32>
    %258 = arith.select %18, %250, %243 : vector<2x384xi1>, vector<2x384xf32>
    %cst_47 = arith.constant 0.000000e+00 : f32
    %259 = vector.broadcast %cst_47 : f32 to vector<2x64xf32>
    %cst_48 = arith.constant dense<0.000000e+00> : vector<2x384xf32>
    %260 = tpu.matmul %259, %242, %cst_48 {dimension_numbers = #tpu.dot_dimension_numbers<[1], [0], [0], [1], [0, 0, 1, 1], [], []>} : vector<2x64xf32>, vector<64x384xf32>, vector<2x384xf32> -> vector<2x384xf32>
    %261 = arith.addf %260, %241 : vector<2x384xf32>
    %262 = vector.extract_strided_slice %251 {offsets = [0, 0], sizes = [2, 256], strides = [1, 1]} : vector<2x384xf32> to vector<2x256xf32>
    %263 = vector.extract_strided_slice %261 {offsets = [0, 0], sizes = [2, 256], strides = [1, 1]} : vector<2x384xf32> to vector<2x256xf32>
    %264 = arith.addf %262, %263 : vector<2x256xf32>
    %265 = arith.negf %264 : vector<2x256xf32>
    %266 = math.exp %265 : vector<2x256xf32>
    %cst_49 = arith.constant 1.000000e+00 : f32
    %267 = vector.broadcast %cst_49 : f32 to vector<2x256xf32>
    %268 = arith.addf %267, %266 : vector<2x256xf32>
    %269 = arith.divf %267, %268 : vector<2x256xf32>
    %270 = vector.extract_strided_slice %269 {offsets = [0, 0], sizes = [2, 64], strides = [1, 1]} : vector<2x256xf32> to vector<2x64xf32>
    %271 = vector.extract_strided_slice %269 {offsets = [0, 128], sizes = [2, 64], strides = [1, 1]} : vector<2x256xf32> to vector<2x64xf32>
    %272 = vector.extract_strided_slice %251 {offsets = [0, 256], sizes = [2, 64], strides = [1, 1]} : vector<2x384xf32> to vector<2x64xf32>
    %273 = vector.extract_strided_slice %261 {offsets = [0, 256], sizes = [2, 64], strides = [1, 1]} : vector<2x384xf32> to vector<2x64xf32>
    %274 = arith.mulf %270, %273 : vector<2x64xf32>
    %275 = arith.addf %272, %274 : vector<2x64xf32>
    %276 = math.tanh %275 : vector<2x64xf32>
    %cst_50 = arith.constant 1.000000e+00 : f32
    %277 = vector.broadcast %cst_50 : f32 to vector<2x64xf32>
    %278 = arith.subf %277, %271 : vector<2x64xf32>
    %279 = arith.mulf %278, %276 : vector<2x64xf32>
    %280 = arith.mulf %271, %259 : vector<2x64xf32>
    %281 = arith.addf %279, %280 : vector<2x64xf32>
    %cst_51 = arith.constant dense<0.000000e+00> : vector<2x384xf32>
    %282 = tpu.matmul %281, %242, %cst_51 {dimension_numbers = #tpu.dot_dimension_numbers<[1], [0], [0], [1], [0, 0, 1, 1], [], []>} : vector<2x64xf32>, vector<64x384xf32>, vector<2x384xf32> -> vector<2x384xf32>
    %283 = arith.addf %282, %241 : vector<2x384xf32>
    %284 = vector.extract_strided_slice %252 {offsets = [0, 0], sizes = [2, 256], strides = [1, 1]} : vector<2x384xf32> to vector<2x256xf32>
    %285 = vector.extract_strided_slice %283 {offsets = [0, 0], sizes = [2, 256], strides = [1, 1]} : vector<2x384xf32> to vector<2x256xf32>
    %286 = arith.addf %284, %285 : vector<2x256xf32>
    %287 = arith.negf %286 : vector<2x256xf32>
    %288 = math.exp %287 : vector<2x256xf32>
    %cst_52 = arith.constant 1.000000e+00 : f32
    %289 = vector.broadcast %cst_52 : f32 to vector<2x256xf32>
    %290 = arith.addf %289, %288 : vector<2x256xf32>
    %291 = arith.divf %289, %290 : vector<2x256xf32>
    %292 = vector.extract_strided_slice %291 {offsets = [0, 0], sizes = [2, 64], strides = [1, 1]} : vector<2x256xf32> to vector<2x64xf32>
    %293 = vector.extract_strided_slice %291 {offsets = [0, 128], sizes = [2, 64], strides = [1, 1]} : vector<2x256xf32> to vector<2x64xf32>
    %294 = vector.extract_strided_slice %252 {offsets = [0, 256], sizes = [2, 64], strides = [1, 1]} : vector<2x384xf32> to vector<2x64xf32>
    %295 = vector.extract_strided_slice %283 {offsets = [0, 256], sizes = [2, 64], strides = [1, 1]} : vector<2x384xf32> to vector<2x64xf32>
    %296 = arith.mulf %292, %295 : vector<2x64xf32>
    %297 = arith.addf %294, %296 : vector<2x64xf32>
    %298 = math.tanh %297 : vector<2x64xf32>
    %cst_53 = arith.constant 1.000000e+00 : f32
    %299 = vector.broadcast %cst_53 : f32 to vector<2x64xf32>
    %300 = arith.subf %299, %293 : vector<2x64xf32>
    %301 = arith.mulf %300, %298 : vector<2x64xf32>
    %302 = arith.mulf %293, %281 : vector<2x64xf32>
    %303 = arith.addf %301, %302 : vector<2x64xf32>
    %cst_54 = arith.constant dense<0.000000e+00> : vector<2x384xf32>
    %304 = tpu.matmul %303, %242, %cst_54 {dimension_numbers = #tpu.dot_dimension_numbers<[1], [0], [0], [1], [0, 0, 1, 1], [], []>} : vector<2x64xf32>, vector<64x384xf32>, vector<2x384xf32> -> vector<2x384xf32>
    %305 = arith.addf %304, %241 : vector<2x384xf32>
    %306 = vector.extract_strided_slice %253 {offsets = [0, 0], sizes = [2, 256], strides = [1, 1]} : vector<2x384xf32> to vector<2x256xf32>
    %307 = vector.extract_strided_slice %305 {offsets = [0, 0], sizes = [2, 256], strides = [1, 1]} : vector<2x384xf32> to vector<2x256xf32>
    %308 = arith.addf %306, %307 : vector<2x256xf32>
    %309 = arith.negf %308 : vector<2x256xf32>
    %310 = math.exp %309 : vector<2x256xf32>
    %cst_55 = arith.constant 1.000000e+00 : f32
    %311 = vector.broadcast %cst_55 : f32 to vector<2x256xf32>
    %312 = arith.addf %311, %310 : vector<2x256xf32>
    %313 = arith.divf %311, %312 : vector<2x256xf32>
    %314 = vector.extract_strided_slice %313 {offsets = [0, 0], sizes = [2, 64], strides = [1, 1]} : vector<2x256xf32> to vector<2x64xf32>
    %315 = vector.extract_strided_slice %313 {offsets = [0, 128], sizes = [2, 64], strides = [1, 1]} : vector<2x256xf32> to vector<2x64xf32>
    %316 = vector.extract_strided_slice %253 {offsets = [0, 256], sizes = [2, 64], strides = [1, 1]} : vector<2x384xf32> to vector<2x64xf32>
    %317 = vector.extract_strided_slice %305 {offsets = [0, 256], sizes = [2, 64], strides = [1, 1]} : vector<2x384xf32> to vector<2x64xf32>
    %318 = arith.mulf %314, %317 : vector<2x64xf32>
    %319 = arith.addf %316, %318 : vector<2x64xf32>
    %320 = math.tanh %319 : vector<2x64xf32>
    %cst_56 = arith.constant 1.000000e+00 : f32
    %321 = vector.broadcast %cst_56 : f32 to vector<2x64xf32>
    %322 = arith.subf %321, %315 : vector<2x64xf32>
    %323 = arith.mulf %322, %320 : vector<2x64xf32>
    %324 = arith.mulf %315, %303 : vector<2x64xf32>
    %325 = arith.addf %323, %324 : vector<2x64xf32>
    %cst_57 = arith.constant dense<0.000000e+00> : vector<2x384xf32>
    %326 = tpu.matmul %325, %242, %cst_57 {dimension_numbers = #tpu.dot_dimension_numbers<[1], [0], [0], [1], [0, 0, 1, 1], [], []>} : vector<2x64xf32>, vector<64x384xf32>, vector<2x384xf32> -> vector<2x384xf32>
    %327 = arith.addf %326, %241 : vector<2x384xf32>
    %328 = vector.extract_strided_slice %254 {offsets = [0, 0], sizes = [2, 256], strides = [1, 1]} : vector<2x384xf32> to vector<2x256xf32>
    %329 = vector.extract_strided_slice %327 {offsets = [0, 0], sizes = [2, 256], strides = [1, 1]} : vector<2x384xf32> to vector<2x256xf32>
    %330 = arith.addf %328, %329 : vector<2x256xf32>
    %331 = arith.negf %330 : vector<2x256xf32>
    %332 = math.exp %331 : vector<2x256xf32>
    %cst_58 = arith.constant 1.000000e+00 : f32
    %333 = vector.broadcast %cst_58 : f32 to vector<2x256xf32>
    %334 = arith.addf %333, %332 : vector<2x256xf32>
    %335 = arith.divf %333, %334 : vector<2x256xf32>
    %336 = vector.extract_strided_slice %335 {offsets = [0, 0], sizes = [2, 64], strides = [1, 1]} : vector<2x256xf32> to vector<2x64xf32>
    %337 = vector.extract_strided_slice %335 {offsets = [0, 128], sizes = [2, 64], strides = [1, 1]} : vector<2x256xf32> to vector<2x64xf32>
    %338 = vector.extract_strided_slice %254 {offsets = [0, 256], sizes = [2, 64], strides = [1, 1]} : vector<2x384xf32> to vector<2x64xf32>
    %339 = vector.extract_strided_slice %327 {offsets = [0, 256], sizes = [2, 64], strides = [1, 1]} : vector<2x384xf32> to vector<2x64xf32>
    %340 = arith.mulf %336, %339 : vector<2x64xf32>
    %341 = arith.addf %338, %340 : vector<2x64xf32>
    %342 = math.tanh %341 : vector<2x64xf32>
    %cst_59 = arith.constant 1.000000e+00 : f32
    %343 = vector.broadcast %cst_59 : f32 to vector<2x64xf32>
    %344 = arith.subf %343, %337 : vector<2x64xf32>
    %345 = arith.mulf %344, %342 : vector<2x64xf32>
    %346 = arith.mulf %337, %325 : vector<2x64xf32>
    %347 = arith.addf %345, %346 : vector<2x64xf32>
    %cst_60 = arith.constant dense<0.000000e+00> : vector<2x384xf32>
    %348 = tpu.matmul %347, %242, %cst_60 {dimension_numbers = #tpu.dot_dimension_numbers<[1], [0], [0], [1], [0, 0, 1, 1], [], []>} : vector<2x64xf32>, vector<64x384xf32>, vector<2x384xf32> -> vector<2x384xf32>
    %349 = arith.addf %348, %241 : vector<2x384xf32>
    %350 = vector.extract_strided_slice %255 {offsets = [0, 0], sizes = [2, 256], strides = [1, 1]} : vector<2x384xf32> to vector<2x256xf32>
    %351 = vector.extract_strided_slice %349 {offsets = [0, 0], sizes = [2, 256], strides = [1, 1]} : vector<2x384xf32> to vector<2x256xf32>
    %352 = arith.addf %350, %351 : vector<2x256xf32>
    %353 = arith.negf %352 : vector<2x256xf32>
    %354 = math.exp %353 : vector<2x256xf32>
    %cst_61 = arith.constant 1.000000e+00 : f32
    %355 = vector.broadcast %cst_61 : f32 to vector<2x256xf32>
    %356 = arith.addf %355, %354 : vector<2x256xf32>
    %357 = arith.divf %355, %356 : vector<2x256xf32>
    %358 = vector.extract_strided_slice %357 {offsets = [0, 0], sizes = [2, 64], strides = [1, 1]} : vector<2x256xf32> to vector<2x64xf32>
    %359 = vector.extract_strided_slice %357 {offsets = [0, 128], sizes = [2, 64], strides = [1, 1]} : vector<2x256xf32> to vector<2x64xf32>
    %360 = vector.extract_strided_slice %255 {offsets = [0, 256], sizes = [2, 64], strides = [1, 1]} : vector<2x384xf32> to vector<2x64xf32>
    %361 = vector.extract_strided_slice %349 {offsets = [0, 256], sizes = [2, 64], strides = [1, 1]} : vector<2x384xf32> to vector<2x64xf32>
    %362 = arith.mulf %358, %361 : vector<2x64xf32>
    %363 = arith.addf %360, %362 : vector<2x64xf32>
    %364 = math.tanh %363 : vector<2x64xf32>
    %cst_62 = arith.constant 1.000000e+00 : f32
    %365 = vector.broadcast %cst_62 : f32 to vector<2x64xf32>
    %366 = arith.subf %365, %359 : vector<2x64xf32>
    %367 = arith.mulf %366, %364 : vector<2x64xf32>
    %368 = arith.mulf %359, %347 : vector<2x64xf32>
    %369 = arith.addf %367, %368 : vector<2x64xf32>
    %cst_63 = arith.constant dense<0.000000e+00> : vector<2x384xf32>
    %370 = tpu.matmul %369, %242, %cst_63 {dimension_numbers = #tpu.dot_dimension_numbers<[1], [0], [0], [1], [0, 0, 1, 1], [], []>} : vector<2x64xf32>, vector<64x384xf32>, vector<2x384xf32> -> vector<2x384xf32>
    %371 = arith.addf %370, %241 : vector<2x384xf32>
    %372 = vector.extract_strided_slice %256 {offsets = [0, 0], sizes = [2, 256], strides = [1, 1]} : vector<2x384xf32> to vector<2x256xf32>
    %373 = vector.extract_strided_slice %371 {offsets = [0, 0], sizes = [2, 256], strides = [1, 1]} : vector<2x384xf32> to vector<2x256xf32>
    %374 = arith.addf %372, %373 : vector<2x256xf32>
    %375 = arith.negf %374 : vector<2x256xf32>
    %376 = math.exp %375 : vector<2x256xf32>
    %cst_64 = arith.constant 1.000000e+00 : f32
    %377 = vector.broadcast %cst_64 : f32 to vector<2x256xf32>
    %378 = arith.addf %377, %376 : vector<2x256xf32>
    %379 = arith.divf %377, %378 : vector<2x256xf32>
    %380 = vector.extract_strided_slice %379 {offsets = [0, 0], sizes = [2, 64], strides = [1, 1]} : vector<2x256xf32> to vector<2x64xf32>
    %381 = vector.extract_strided_slice %379 {offsets = [0, 128], sizes = [2, 64], strides = [1, 1]} : vector<2x256xf32> to vector<2x64xf32>
    %382 = vector.extract_strided_slice %256 {offsets = [0, 256], sizes = [2, 64], strides = [1, 1]} : vector<2x384xf32> to vector<2x64xf32>
    %383 = vector.extract_strided_slice %371 {offsets = [0, 256], sizes = [2, 64], strides = [1, 1]} : vector<2x384xf32> to vector<2x64xf32>
    %384 = arith.mulf %380, %383 : vector<2x64xf32>
    %385 = arith.addf %382, %384 : vector<2x64xf32>
    %386 = math.tanh %385 : vector<2x64xf32>
    %cst_65 = arith.constant 1.000000e+00 : f32
    %387 = vector.broadcast %cst_65 : f32 to vector<2x64xf32>
    %388 = arith.subf %387, %381 : vector<2x64xf32>
    %389 = arith.mulf %388, %386 : vector<2x64xf32>
    %390 = arith.mulf %381, %369 : vector<2x64xf32>
    %391 = arith.addf %389, %390 : vector<2x64xf32>
    %cst_66 = arith.constant dense<0.000000e+00> : vector<2x384xf32>
    %392 = tpu.matmul %391, %242, %cst_66 {dimension_numbers = #tpu.dot_dimension_numbers<[1], [0], [0], [1], [0, 0, 1, 1], [], []>} : vector<2x64xf32>, vector<64x384xf32>, vector<2x384xf32> -> vector<2x384xf32>
    %393 = arith.addf %392, %241 : vector<2x384xf32>
    %394 = vector.extract_strided_slice %257 {offsets = [0, 0], sizes = [2, 256], strides = [1, 1]} : vector<2x384xf32> to vector<2x256xf32>
    %395 = vector.extract_strided_slice %393 {offsets = [0, 0], sizes = [2, 256], strides = [1, 1]} : vector<2x384xf32> to vector<2x256xf32>
    %396 = arith.addf %394, %395 : vector<2x256xf32>
    %397 = arith.negf %396 : vector<2x256xf32>
    %398 = math.exp %397 : vector<2x256xf32>
    %cst_67 = arith.constant 1.000000e+00 : f32
    %399 = vector.broadcast %cst_67 : f32 to vector<2x256xf32>
    %400 = arith.addf %399, %398 : vector<2x256xf32>
    %401 = arith.divf %399, %400 : vector<2x256xf32>
    %402 = vector.extract_strided_slice %401 {offsets = [0, 0], sizes = [2, 64], strides = [1, 1]} : vector<2x256xf32> to vector<2x64xf32>
    %403 = vector.extract_strided_slice %401 {offsets = [0, 128], sizes = [2, 64], strides = [1, 1]} : vector<2x256xf32> to vector<2x64xf32>
    %404 = vector.extract_strided_slice %257 {offsets = [0, 256], sizes = [2, 64], strides = [1, 1]} : vector<2x384xf32> to vector<2x64xf32>
    %405 = vector.extract_strided_slice %393 {offsets = [0, 256], sizes = [2, 64], strides = [1, 1]} : vector<2x384xf32> to vector<2x64xf32>
    %406 = arith.mulf %402, %405 : vector<2x64xf32>
    %407 = arith.addf %404, %406 : vector<2x64xf32>
    %408 = math.tanh %407 : vector<2x64xf32>
    %cst_68 = arith.constant 1.000000e+00 : f32
    %409 = vector.broadcast %cst_68 : f32 to vector<2x64xf32>
    %410 = arith.subf %409, %403 : vector<2x64xf32>
    %411 = arith.mulf %410, %408 : vector<2x64xf32>
    %412 = arith.mulf %403, %391 : vector<2x64xf32>
    %413 = arith.addf %411, %412 : vector<2x64xf32>
    %cst_69 = arith.constant dense<0.000000e+00> : vector<2x384xf32>
    %414 = tpu.matmul %413, %242, %cst_69 {dimension_numbers = #tpu.dot_dimension_numbers<[1], [0], [0], [1], [0, 0, 1, 1], [], []>} : vector<2x64xf32>, vector<64x384xf32>, vector<2x384xf32> -> vector<2x384xf32>
    %415 = arith.addf %414, %241 : vector<2x384xf32>
    %416 = vector.extract_strided_slice %258 {offsets = [0, 0], sizes = [2, 256], strides = [1, 1]} : vector<2x384xf32> to vector<2x256xf32>
    %417 = vector.extract_strided_slice %415 {offsets = [0, 0], sizes = [2, 256], strides = [1, 1]} : vector<2x384xf32> to vector<2x256xf32>
    %418 = arith.addf %416, %417 : vector<2x256xf32>
    %419 = arith.negf %418 : vector<2x256xf32>
    %420 = math.exp %419 : vector<2x256xf32>
    %cst_70 = arith.constant 1.000000e+00 : f32
    %421 = vector.broadcast %cst_70 : f32 to vector<2x256xf32>
    %422 = arith.addf %421, %420 : vector<2x256xf32>
    %423 = arith.divf %421, %422 : vector<2x256xf32>
    %424 = vector.extract_strided_slice %423 {offsets = [0, 0], sizes = [2, 64], strides = [1, 1]} : vector<2x256xf32> to vector<2x64xf32>
    %425 = vector.extract_strided_slice %423 {offsets = [0, 128], sizes = [2, 64], strides = [1, 1]} : vector<2x256xf32> to vector<2x64xf32>
    %426 = vector.extract_strided_slice %258 {offsets = [0, 256], sizes = [2, 64], strides = [1, 1]} : vector<2x384xf32> to vector<2x64xf32>
    %427 = vector.extract_strided_slice %415 {offsets = [0, 256], sizes = [2, 64], strides = [1, 1]} : vector<2x384xf32> to vector<2x64xf32>
    %428 = arith.mulf %424, %427 : vector<2x64xf32>
    %429 = arith.addf %426, %428 : vector<2x64xf32>
    %430 = math.tanh %429 : vector<2x64xf32>
    %cst_71 = arith.constant 1.000000e+00 : f32
    %431 = vector.broadcast %cst_71 : f32 to vector<2x64xf32>
    %432 = arith.subf %431, %425 : vector<2x64xf32>
    %433 = arith.mulf %432, %430 : vector<2x64xf32>
    %434 = arith.mulf %425, %413 : vector<2x64xf32>
    %435 = arith.addf %433, %434 : vector<2x64xf32>
    %436 = arith.addf %281, %303 : vector<2x64xf32>
    %437 = arith.addf %436, %325 : vector<2x64xf32>
    %438 = arith.addf %437, %347 : vector<2x64xf32>
    %439 = arith.addf %438, %369 : vector<2x64xf32>
    %440 = arith.addf %439, %391 : vector<2x64xf32>
    %441 = arith.addf %440, %413 : vector<2x64xf32>
    %442 = arith.addf %441, %435 : vector<2x64xf32>
    %c0_72 = arith.constant 0 : index
    %c0_73 = arith.constant 0 : index
    %443 = vector.load %arg9[%c0_72, %c0_73] : memref<64x128xf32, #tpu.memory_space<vmem>>, vector<64x128xf32>
    %cst_74 = arith.constant dense<0.000000e+00> : vector<2x128xf32>
    %444 = tpu.matmul %442, %443, %cst_74 {dimension_numbers = #tpu.dot_dimension_numbers<[1], [0], [0], [1], [0, 0, 1, 1], [], []>} : vector<2x64xf32>, vector<64x128xf32>, vector<2x128xf32> -> vector<2x128xf32>
    %c0_75 = arith.constant 0 : index
    %c0_76 = arith.constant 0 : index
    %445 = vector.load %arg10[%c0_75, %c0_76] : memref<2x128xf32, #tpu.memory_space<vmem>>, vector<2x128xf32>
    tpu.vector_store %arg10[%c0_75, %c0_76], %444 {strides = array<i32>} : memref<2x128xf32, #tpu.memory_space<vmem>>, vector<2x128xf32>,
    return
  }
}

</mosaic_0001>

<bundles_post_ra>
// kernel: model_forward.1
= control target key start
LH: loop header
LB: loop body
LE: loop exit
PB: predicated region body
PF: predicated region fallthrough
CT: control target
= control target key end

     0   :  { %v4842_v7 = vmov 0.0   ;;  %vm111_vm0 = vcmask 261120   ;;  %s5933_s0 = inlined_call_operand.vmem [shape: f32[16,32], index: 0, kind: input, shape index: {}]   ;;  %s5934_s1 = inlined_call_operand.vmem [shape: f32[32,384], index: 1, kind: input, shape index: {}]   ;;  %s5935_s2 = inlined_call_operand.vmem [shape: f32[1,384], index: 2, kind: input, shape index: {}]   ;;  %s5936_s3 = inlined_call_operand.vmem [shape: f32[64,384], index: 3, kind: input, shape index: {}]   ;;  %s5937_s4 = inlined_call_operand.vmem [shape: f32[1,384], index: 4, kind: input, shape index: {}]   ;;  %s5938_s5 = inlined_call_operand.vmem [shape: f32[64,384], index: 5, kind: input, shape index: {}]   ;;  %s5939_s6 = inlined_call_operand.vmem [shape: f32[1,384], index: 6, kind: input, shape index: {}]   ;;  %s5940_s7 = inlined_call_operand.vmem [shape: f32[64,384], index: 7, kind: input, shape index: {}]   ;;  %s5941_s8 = inlined_call_operand.vmem [shape: f32[1,384], index: 8, kind: input, shape index: {}]   ;;  %s5942_s9 = inlined_call_operand.vmem [shape: f32[64,128], index: 9, kind: input, shape index: {}]   ;;  %s5943_s10 = inlined_call_operand.hbm [shape: f32[2,128], index: 10, kind: output, shape index: {}]  }
   0x1   :  { %v83_v0 = vld [vmem:[%s5934_s1 + $0x8] sm:$0xff]  ;;  %v86_v1 = vld [vmem:[%s5934_s1 + $0x20] sm:$0xff]  ;;  %v85_v6 = vld [vmem:[%s5934_s1 + $0x18] sm:$0xff]  ;;  %182 = vmatprep.mubr.f32.mxu1 %v4842_v7  ;;  %421 = vmatprep.mubr.f32.mxu0 %v4842_v7 }
   0x2   :  { %v288_v2 = vld [vmem:[%s5936_s3 + $0x8] sm:$0xff]  ;;  %v4146_v3 = vpack.c.bf16 %v86_v1, %v83_v0  ;;  %v291_v4 = vld [vmem:[%s5936_s3 + $0x20] sm:$0xff]  ;;  %v290_v11 = vld [vmem:[%s5936_s3 + $0x18] sm:$0xff] }
   0x3   :  { %v82_v5 = vld [vmem:[%s5934_s1] sm:$0xff]  ;;  %v4921_v8 = vpack.c.bf16 %v291_v4, %v288_v2  ;;  %v89_v12 = vld [vmem:[%s5934_s1 + $0x38] sm:$0xff]  ;;  %v92_v14 = vld [vmem:[%s5934_s1 + $0x50] sm:$0xff] }
   0x4   :  { %v4148_v9 = vpack.c.bf16 %v85_v6, %v82_v5  ;;  %v287_v10 = vld [vmem:[%s5936_s3] sm:$0xff]  ;;  %4147 = vmatprep.subr.bf16.mxu1 %v4146_v3  ;;  %v294_v15 = vld [vmem:[%s5936_s3 + $0x38] sm:$0xff]  ;;  %v297_v16 = vld [vmem:[%s5936_s3 + $0x50] sm:$0xff]  ;;  %v4150_v17 = vpack.c.bf16 %v92_v14, %v89_v12 }
   0x5   :  { %v4932_v13 = vpack.c.bf16 %v290_v11, %v287_v10  ;;  %4163 = vmatprep.subr.bf16.mxu0 %v4921_v8  ;;  %v4944_v18 = vpack.c.bf16 %v297_v16, %v294_v15  ;;  %v88_v19 = vld [vmem:[%s5934_s1 + $0x30] sm:$0xff]  ;;  %v91_v20 = vld [vmem:[%s5934_s1 + $0x48] sm:$0xff]  ;;  %v303_v26 = vld [vmem:[%s5936_s3 + $0x80] sm:$0xff] }
   0x6   :  { %4149 = vmatpush1.bf16.msra.mxu1 %v4148_v9  ;;  %v293_v21 = vld [vmem:[%s5936_s3 + $0x30] sm:$0xff]  ;;  %v4152_v22 = vpack.c.bf16 %v91_v20, %v88_v19  ;;  %v296_v23 = vld [vmem:[%s5936_s3 + $0x48] sm:$0xff]  ;;  %v299_v27 = vld [vmem:[%s5936_s3 + $0x60] sm:$0xff] }
   0x7   :  { %4165 = vmatpush1.bf16.msra.mxu0 %v4932_v13  ;;  %v300_v24 = vld [vmem:[%s5936_s3 + $0x68] sm:$0xff]  ;;  %4151 = vmatprep.subr.bf16.mxu1 %v4150_v17  ;;  %v4963_v25 = vpack.c.bf16 %v296_v23, %v293_v21  ;;  %v302_v28 = vld [vmem:[%s5936_s3 + $0x78] sm:$0xff]  ;;  %v309_v31 = vld [vmem:[%s5936_s3 + $0xb0] sm:$0xff] }
   0x8   :  { %4167 = vmatprep.subr.bf16.mxu0 %v4944_v18  ;;  %v4974_v29 = vpack.c.bf16 %v303_v26, %v300_v24  ;;  %v306_v30 = vld [vmem:[%s5936_s3 + $0x98] sm:$0xff]  ;;  %v80_v32 = vld [vmem:[%s5933_s0] sm:$0xff]  ;;  %v84_v33 = vld [vmem:[%s5934_s1 + $0x10] sm:$0xff]  ;;  %v4989_v34 = vpack.c.bf16 %v302_v28, %v299_v27 }
   0x9   :  { %v87_v35 = vld [vmem:[%s5934_s1 + $0x28] sm:$0xff]  ;;  %v90_v36 = vld [vmem:[%s5934_s1 + $0x40] sm:$0xff]  ;;  %v93_v37 = vld [vmem:[%s5934_s1 + $0x58] sm:$0xff]  ;;  %v5001_v38 = vpack.c.bf16 %v309_v31, %v306_v30 }
   0xa   :  { %4153 = vmatpush1.bf16.msra.mxu1 %v4152_v22  ;;  %v305_v39 = vld [vmem:[%s5936_s3 + $0x90] sm:$0xff]  ;;  %v308_v40 = vld [vmem:[%s5936_s3 + $0xa8] sm:$0xff]  ;;  %v4154_v41 = vpack.c.bf16 %v87_v35, %v84_v33  ;;  %v4158_v42 = vpack.c.bf16 %v93_v37, %v90_v36 }
   0xb   :  { %4169 = vmatpush1.bf16.msra.mxu0 %v4963_v25  ;;  %v81_v43 = vld [vmem:[%s5933_s0 + $0x8] sm:$0xff]  ;;  %v5015_v44 = vpack.c.bf16 %v308_v40, %v305_v39 }
   0xc   :  { %4171 = vmatprep.subr.bf16.mxu0 %v4974_v29  ;;  %4155 = vmatprep.subr.bf16.mxu1 %v4154_v41 }
   0xd   :  { %3555 = vmatmul.mubr.msk.f32.vlgmr.msra.gmra.mrb[0].mxu1 %vm111_vm0, %v80_v32 }
   0xe   :  { %188 = vmatprep.mubr.f32.mxu1 %v4842_v7  ;;  %4157 = vmatpush3.bf16.msra.mxu1 %v4154_v41 }
   0xf   :  { %4173 = vmatpush1.bf16.msra.mxu0 %v4989_v34 }
  0x10   :  { %15 = vsyncpa [#allocation3], 0  ;;  %4175 = vmatprep.subr.bf16.mxu0 %v5001_v38  ;;  %4159 = vmatprep.subr.bf16.mxu1 %v4158_v42  ;;  %v289_v45 = vld [vmem:[%s5936_s3 + $0x10] sm:$0xff]  ;;  %v292_v46 = vld [vmem:[%s5936_s3 + $0x28] sm:$0xff]  ;;  %v4843_v48 = vmov 0.0|0.0   ;;  %vm4844_vm1 = vmmov 0   ;;  %v36_v58 = vlaneseq }
  0x11   :  { %3556 = vmatmul.mubr.msk.f32.gmra.mrb[2].mxu1 %vm111_vm0, %v81_v43  ;;  %v5027_v47 = vpack.c.bf16 %v292_v46, %v289_v45  ;;  %v295_v49 = vld [vmem:[%s5936_s3 + $0x40] sm:$0xff]  ;;  %v298_v50 = vld [vmem:[%s5936_s3 + $0x58] sm:$0xff]  ;;  %v301_v52 = vld [vmem:[%s5936_s3 + $0x70] sm:$0xff]  ;;  %vm353_vm5 = vcmask 523264   ;;  %vm1765_vm6 = vcmask 1041408   ;;  %vm1767_vm7 = vcmask 1043456  }
  0x12   :  { %3801 = vmatprep.mubr.msk.f32.mxu1 %vm111_vm0, %v80_v32  ;;  %4161 = vmatpush3.bf16.msra.mxu1 %v4158_v42  ;;  %v5040_v51 = vpack.c.bf16 %v298_v50, %v295_v49  ;;  %v304_v53 = vld [vmem:[%s5936_s3 + $0x88] sm:$0xff]  ;;  %v307_v55 = vld [vmem:[%s5936_s3 + $0xa0] sm:$0xff]  ;;  %v310_v56 = vld [vmem:[%s5936_s3 + $0xb8] sm:$0xff]  ;;  %v97_v59 = vshrl.u32 %v36_v58, 7  ;;  %v5087_v60 = vand.u32 127, %v36_v58  ;;  %vm1769_vm8 = vcmask 1045504  }
  0x13   :  { %4177 = vmatpush1.bf16.msra.mxu0 %v5015_v44  ;;  %4178 = vmatprep.subr.bf16.mxu1 %v4843_v48  ;;  %v5055_v54 = vpack.c.bf16 %v304_v53, %v301_v52  ;;  %v5067_v57 = vpack.c.bf16 %v310_v56, %v307_v55  ;;  %v94_v62 = vld [vmem:[%s5935_s2] sm:$0x7] }
  0x14   :  { %4191 = vmatprep.subr.bf16.mxu0 %v4921_v8  ;;  %v5089_v61 = vsub.s32 0, %v97_v59  ;;  %v5094_v63 = vsub.s32 1, %v97_v59  ;;  %v38_v1 = vadd.s32 128, %v5087_v60  ;;  %v270_v5 = vld [vmem:[%s5937_s4] sm:$0x7]  ;;  %v5102_v10 = vsub.s32 2, %v97_v59 }
  0x15   :  { %3802 = vmatmul.mubr.msk.f32.vlgmr.msra.gmra.mrb[4].mxu1 %vm111_vm0, %v81_v43  ;;  %v39_v12 = vadd.s32 256, %v5087_v60  ;;  %vm76_vm2 = vcmp.lt.s32.totalorder %v5087_v60, 32 }
  0x16   :  { %422 = vmatmul.mubr.f32.vlgmr.msra.gmra.mrb[0].mxu0 %v4842_v7  ;;  %4180 = vmatpush3.bf16.msra.mxu1 %v5027_v47  ;;  %v99_v0 = vrot.slane %v94_v62, %v5089_v61  ;;  %v103_v2 = vrot.slane %v94_v62, %v5094_v63  ;;  %v51_v9 = vand.u32 127, %v38_v1  ;;  %v5107_v16 = vrot.slane %v270_v5, %v5089_v61 }
  0x17   :  { %3820 = vmatprep.mubr.msk.f32.mxu1 %vm4844_vm1, %v4842_v7  ;;  %4181 = vmatprep.subr.bf16.mxu1 %v4843_v48  ;;  %v5110_v19 = vrot.slane %v270_v5, %v5094_v63  ;;  %v107_v23 = vrot.slane %v94_v62, %v5102_v10  ;;  %v58_v26 = vand.u32 127, %v39_v12 }
  0x18   :  { %4193 = vmatpush1.bf16.msra.mxu0 %v4932_v13  ;;  %586 = vmatprep.mubr.f32.mxu0 %v4842_v7  ;;  %vm5112_vm3 = vcmp.lt.s32.totalorder %v51_v9, 32 }
  0x19   :  { %4195 = vmatprep.subr.bf16.mxu0 %v4944_v18  ;;  %vm5151_vm4 = vcmp.lt.s32.totalorder %v58_v26, 32 }
  0x1a   :  { %4183 = vmatpush3.bf16.msra.mxu1 %v5040_v51 }
  0x1b   :  { %4184 = vmatprep.subr.bf16.mxu1 %v4843_v48 }
  0x1c   :  { %4197 = vmatpush1.bf16.msra.mxu0 %v4963_v25 }
  0x1d   :  { %4199 = vmatprep.subr.bf16.mxu0 %v4974_v29 }
  0x1e   :  { %4186 = vmatpush3.bf16.msra.mxu1 %v5055_v54 }
  0x1f   :  { %4187 = vmatprep.subr.bf16.mxu1 %v4843_v48 }
  0x20   :  { %4201 = vmatpush1.bf16.msra.mxu0 %v4989_v34 }
  0x21   :  { %4203 = vmatprep.subr.bf16.mxu0 %v5001_v38 }
  0x22   :  { %4189 = vmatpush3.bf16.msra.mxu1 %v5067_v57 }
  0x23   :  { %4206 = vmatprep.subr.bf16.mxu1 %v4843_v48 }
  0x24   :  { %4205 = vmatpush1.bf16.msra.mxu0 %v5015_v44 }
  0x25   :  { %4219 = vmatprep.subr.bf16.mxu0 %v4921_v8  ;;  %3821 = vmatmul.mubr.f32.vlgmr.msra.gmra.mrb[6].mxu1 %v4842_v7 }
  0x26   :  { %4208 = vmatpush3.bf16.msra.mxu1 %v5027_v47  ;;  %3839 = vmatprep.mubr.msk.f32.mxu1 %vm4844_vm1, %v4842_v7 }
  0x27   :  { %4209 = vmatprep.subr.bf16.mxu1 %v4843_v48 }
  0x2a   :  { %4211 = vmatpush3.bf16.msra.mxu1 %v5040_v51 }
  0x2b   :  { %4212 = vmatprep.subr.bf16.mxu1 %v4843_v48 }
  0x2e   :  { %4214 = vmatpush3.bf16.msra.mxu1 %v5055_v54 }
  0x2f   :  { %4215 = vmatprep.subr.bf16.mxu1 %v4843_v48 }
  0x32   :  { %4217 = vmatpush3.bf16.msra.mxu1 %v5067_v57 }
  0x33   :  { %4234 = vmatprep.subr.bf16.mxu1 %v4843_v48 }
  0xe0   :  { %v184_v3 = vpop.f32.mrb[0].mxu1 }
  0xe1   :  { %v185_v4 = vadd.f32 %v184_v3, %v99_v0  ;;  %v186_v6 = vpop.f32.mrb[1].mxu1 }
  0xe2   :  { %v187_v11 = vadd.f32 %v186_v6, %v103_v2 }
  0xe3   :  { %v335_v14 = vrot.slane %v185_v4, 6  ;;  %v344_v15 = vrot.slane %v185_v4, 2 }
  0xe4   :  { %v190_v17 = vpop.f32.mrb[2].mxu1  ;;  %v336_v27 = vrot.slane %v187_v11, 6  ;;  %v345_v28 = vrot.slane %v187_v11, 2 }
  0xe5   :  { %v191_v20 = vadd.f32 %v190_v17, %v99_v0  ;;  %v192_v21 = vpop.f32.mrb[3].mxu1 }
  0xe6   :  { %v193_v24 = vadd.f32 %v192_v21, %v103_v2 }
  0xe7   :  { %v314_v30 = vrot.slane %v191_v20, 6  ;;  %v323_v31 = vrot.slane %v191_v20, 2  ;;  %v5119_v32 = vsel %vm76_vm2, %v191_v20, %v335_v14  ;;  %v5123_v33 = vsel %vm76_vm2, %v191_v20, %v344_v15 }
  0xe8   :  { %v315_v35 = vrot.slane %v193_v24, 6  ;;  %v324_v36 = vrot.slane %v193_v24, 2  ;;  %v5127_v37 = vsel %vm5112_vm3, %v193_v24, %v336_v27  ;;  %v5131_v39 = vsel %vm5112_vm3, %v193_v24, %v345_v28  ;;  %v3803_v42 = vpop.f32.mrb[4].mxu1 }
  0xe9   :  { %v5135_v40 = vsel %vm76_vm2, %v185_v4, %v314_v30  ;;  %v423_v41 = vpop.f32.mrb[0].mxu0  ;;  %v5139_v43 = vsel %vm76_vm2, %v185_v4, %v323_v31  ;;  %v267_v50 = vadd.f32 %v3803_v42, %v107_v23  ;;  %v261_v52 = vpop.f32.mrb[5].mxu1 }
  0xea   :  { %v424_v45 = vadd.f32 %v423_v41, %v5107_v16  ;;  %v5144_v46 = vsel %vm5112_vm3, %v187_v11, %v315_v35  ;;  %v425_v49 = vpop.f32.mrb[1].mxu0  ;;  %v5148_v53 = vsel %vm5112_vm3, %v187_v11, %v324_v36  ;;  %v262_v56 = vadd.f32 %v261_v52, %v107_v23 }
  0xeb   :  { %v426_v55 = vadd.f32 %v425_v49, %v5110_v19  ;;  %v316_v62 = vrot.slane %v267_v50, 6  ;;  %v325_v0 = vrot.slane %v267_v50, 2  ;;  %v5174_v23 = vrot.slane %v270_v5, %v5102_v10 }
  0xec   :  { %v498_v59 = vadd.f32 %v424_v45, %v5135_v40  ;;  %v337_v1 = vrot.slane %v262_v56, 6  ;;  %v346_v2 = vrot.slane %v262_v56, 2 }
  0xed   :  { %v5158_v4 = vsel %vm5151_vm4, %v262_v56, %v316_v62  ;;  %v5162_v6 = vsel %vm5151_vm4, %v262_v56, %v325_v0  ;;  %v499_v9 = vadd.f32 %v426_v55, %v5144_v46 }
  0xee   :  { %v3559_v3 = vmul.f32 -1.442695, %v498_v59  ;;  %v5167_v11 = vsel %vm5151_vm4, %v267_v50, %v337_v1  ;;  %v5171_v12 = vsel %vm5151_vm4, %v267_v50, %v346_v2 }
  0xef   :  { %v3560_v14 = vmul.f32 -1.442695, %v499_v9 }
  0xf0   :  { %4658 = vpow2.f32 %v3559_v3 }
  0xf1   :  { %4660 = vpow2.f32 %v3560_v14 }
  0xf8   :  { %v494_v15 = vpop.f32.mrb[6].mxu1 }
  0xf9   :  { %v3822_v20 = vpop.f32.mrb[7].mxu1  ;;  %v495_v27 = vadd.f32 %v494_v15, %v5174_v23 }
  0xfa   :  { %v4659_v17 = vpop.eup %4658 }
  0xfb   :  { %v506_v21 = vadd.f32 1.0, %v4659_v17  ;;  %v4661_v24 = vpop.eup %4660 }
  0xfc   :  { %v507_v26 = vadd.f32 1.0, %v4661_v24 }
  0xfd   :  { %4662 = vrcp.f32 %v506_v21 }
  0xfe   :  { %4664 = vrcp.f32 %v507_v26 }
 0x107   :  { %v4663_v28 = vpop.eup %4662 }
 0x108   :  { %v512_v30 = vmul.f32 %v4663_v28, %v495_v27  ;;  %v4665_v35 = vpop.eup %4664 }
 0x109   :  { %v515_v36 = vsub.f32 1.0, %v4665_v35  ;;  %v517_v45 = vmul.f32 0.0, %v4665_v35 }
 0x10a   :  { %v513_v31 = vadd.f32 %v512_v30, %v5158_v4 }
 0x10c   :  { %4666 = vtanh.f32 %v513_v31 }
 0x116   :  { %v4667_v41 = vpop.eup %4666 }
 0x117   :  { %v516_v42 = vmul.f32 %v4667_v41, %v515_v36 }
 0x119   :  { %v5178_v49 = vadd.f32 %v517_v45, %v516_v42 }
 0x11b   :  { %3561 = vmatmul.mubr.msk.f32.vlgmr.msra.gmra.mrb[2].mxu0 %vm353_vm5, %v5178_v49  ;;  %3840 = vmatmul.mubr.msk.f32.vlgmr.msra.gmra.mrb[8].mxu1 %vm353_vm5, %v5178_v49  ;;  %v691_v35 = vrot.slane %v5178_v49, 6 }
 0x11c   :  { %4221 = vmatpush1.bf16.msra.mxu0 %v4932_v13  ;;  %4236 = vmatpush3.bf16.msra.mxu1 %v5027_v47 }
 0x11d   :  { %4223 = vmatprep.subr.bf16.mxu0 %v4944_v18  ;;  %4237 = vmatprep.subr.bf16.mxu1 %v4843_v48 }
 0x11e   :  { %763 = vmatprep.mubr.f32.mxu0 %v4842_v7  ;;  %3858 = vmatprep.mubr.msk.f32.mxu1 %vm4844_vm1, %v4842_v7 }
 0x120   :  { %4225 = vmatpush1.bf16.msra.mxu0 %v4963_v25  ;;  %4239 = vmatpush3.bf16.msra.mxu1 %v5040_v51 }
 0x121   :  { %4227 = vmatprep.subr.bf16.mxu0 %v4974_v29  ;;  %4240 = vmatprep.subr.bf16.mxu1 %v4843_v48 }
 0x124   :  { %4229 = vmatpush1.bf16.msra.mxu0 %v4989_v34  ;;  %4242 = vmatpush3.bf16.msra.mxu1 %v5055_v54 }
 0x125   :  { %4231 = vmatprep.subr.bf16.mxu0 %v5001_v38  ;;  %4243 = vmatprep.subr.bf16.mxu1 %v4843_v48 }
 0x128   :  { %4233 = vmatpush1.bf16.msra.mxu0 %v5015_v44  ;;  %4245 = vmatpush3.bf16.msra.mxu1 %v5067_v57 }
 0x129   :  { %4247 = vmatprep.subr.bf16.mxu0 %v4921_v8  ;;  %4262 = vmatprep.subr.bf16.mxu1 %v4843_v48 }
 0x1ee   :  { %v588_v5 = vpop.f32.mrb[2].mxu0  ;;  %v659_v50 = vpop.f32.mrb[8].mxu1 }
 0x1ef   :  { %v589_v52 = vadd.f32 %v588_v5, %v5107_v16  ;;  %v590_v55 = vpop.f32.mrb[3].mxu0  ;;  %v3841_v56 = vpop.f32.mrb[9].mxu1  ;;  %v660_v20 = vadd.f32 %v659_v50, %v5174_v23 }
 0x1f0   :  { %v591_v59 = vadd.f32 %v590_v55, %v5110_v19 }
 0x1f1   :  { %v665_v62 = vrot.slane %v589_v52, 6  ;;  %v684_v24 = vrot.slane %v660_v20, 6 }
 0x1f2   :  { %v666_v0 = vrot.slane %v591_v59, 6 }
 0x1f3   :  { %v669_v1 = vadd.f32 %v665_v62, %v5139_v43 }
 0x1f4   :  { %v670_v3 = vadd.f32 %v666_v0, %v5148_v53 }
 0x1f5   :  { %v3563_v2 = vmul.f32 -1.442695, %v669_v1 }
 0x1f6   :  { %v3564_v9 = vmul.f32 -1.442695, %v670_v3 }
 0x1f7   :  { %4668 = vpow2.f32 %v3563_v2 }
 0x1f8   :  { %4670 = vpow2.f32 %v3564_v9 }
 0x201   :  { %v4669_v14 = vpop.eup %4668 }
 0x202   :  { %v677_v15 = vadd.f32 1.0, %v4669_v14  ;;  %v4671_v17 = vpop.eup %4670 }
 0x203   :  { %v678_v21 = vadd.f32 1.0, %v4671_v17 }
 0x204   :  { %4672 = vrcp.f32 %v677_v15 }
 0x205   :  { %4674 = vrcp.f32 %v678_v21 }
 0x20e   :  { %v4673_v26 = vpop.eup %4672 }
 0x20f   :  { %v686_v27 = vmul.f32 %v4673_v26, %v684_v24  ;;  %v4675_v30 = vpop.eup %4674 }
 0x210   :  { %v689_v31 = vsub.f32 1.0, %v4675_v30  ;;  %v693_v41 = vmul.f32 %v4675_v30, %v691_v35 }
 0x211   :  { %v687_v28 = vadd.f32 %v686_v27, %v5162_v6 }
 0x213   :  { %4676 = vtanh.f32 %v687_v28 }
 0x21d   :  { %v4677_v36 = vpop.eup %4676 }
 0x21e   :  { %v690_v42 = vmul.f32 %v4677_v36, %v689_v31 }
 0x220   :  { %v5210_v45 = vadd.f32 %v693_v41, %v690_v42 }
 0x222   :  { %v696_v5 = vrot.slane %v5210_v45, 2 }
 0x224   :  { %3565 = vmatmul.mubr.msk.f32.vlgmr.msra.gmra.mrb[4].mxu0 %vm353_vm5, %v696_v5  ;;  %3859 = vmatmul.mubr.msk.f32.vlgmr.msra.gmra.mrb[10].mxu1 %vm353_vm5, %v696_v5 }
 0x225   :  { %4249 = vmatpush1.bf16.msra.mxu0 %v4932_v13  ;;  %4264 = vmatpush3.bf16.msra.mxu1 %v5027_v47 }
 0x226   :  { %4251 = vmatprep.subr.bf16.mxu0 %v4944_v18  ;;  %4265 = vmatprep.subr.bf16.mxu1 %v4843_v48 }
 0x227   :  { %940 = vmatprep.mubr.f32.mxu0 %v4842_v7  ;;  %3877 = vmatprep.mubr.msk.f32.mxu1 %vm4844_vm1, %v4842_v7 }
 0x229   :  { %4253 = vmatpush1.bf16.msra.mxu0 %v4963_v25  ;;  %4267 = vmatpush3.bf16.msra.mxu1 %v5040_v51 }
 0x22a   :  { %4255 = vmatprep.subr.bf16.mxu0 %v4974_v29  ;;  %4268 = vmatprep.subr.bf16.mxu1 %v4843_v48 }
 0x22d   :  { %4257 = vmatpush1.bf16.msra.mxu0 %v4989_v34  ;;  %4270 = vmatpush3.bf16.msra.mxu1 %v5055_v54 }
 0x22e   :  { %4259 = vmatprep.subr.bf16.mxu0 %v5001_v38  ;;  %4271 = vmatprep.subr.bf16.mxu1 %v4843_v48 }
 0x231   :  { %4261 = vmatpush1.bf16.msra.mxu0 %v5015_v44  ;;  %4273 = vmatpush3.bf16.msra.mxu1 %v5067_v57 }
 0x232   :  { %4275 = vmatprep.subr.bf16.mxu0 %v4921_v8  ;;  %4290 = vmatprep.subr.bf16.mxu1 %v4843_v48 }
 0x2f7   :  { %v765_v50 = vpop.f32.mrb[4].mxu0  ;;  %v836_v52 = vpop.f32.mrb[10].mxu1 }
 0x2f8   :  { %v766_v55 = vadd.f32 %v765_v50, %v5107_v16  ;;  %v767_v56 = vpop.f32.mrb[5].mxu0  ;;  %v3860_v59 = vpop.f32.mrb[11].mxu1  ;;  %v837_v21 = vadd.f32 %v836_v52, %v5174_v23 }
 0x2f9   :  { %v768_v62 = vadd.f32 %v767_v56, %v5110_v19 }
 0x2fa   :  { %v842_v0 = vrot.slane %v766_v55, 4  ;;  %v861_v26 = vrot.slane %v837_v21, 4 }
 0x2fb   :  { %v843_v1 = vrot.slane %v768_v62, 4 }
 0x2fc   :  { %v846_v2 = vadd.f32 %v842_v0, %v5135_v40 }
 0x2fd   :  { %v847_v9 = vadd.f32 %v843_v1, %v5144_v46  ;;  %v868_v46 = vrot.slane %v5210_v45, 6 }
 0x2fe   :  { %v3567_v3 = vmul.f32 -1.442695, %v846_v2 }
 0x2ff   :  { %v3568_v14 = vmul.f32 -1.442695, %v847_v9 }
 0x300   :  { %4678 = vpow2.f32 %v3567_v3 }
 0x301   :  { %4680 = vpow2.f32 %v3568_v14 }
 0x30a   :  { %v4679_v15 = vpop.eup %4678 }
 0x30b   :  { %v854_v17 = vadd.f32 1.0, %v4679_v15  ;;  %v4681_v20 = vpop.eup %4680 }
 0x30c   :  { %v855_v24 = vadd.f32 1.0, %v4681_v20 }
 0x30d   :  { %4682 = vrcp.f32 %v854_v17 }
 0x30e   :  { %4684 = vrcp.f32 %v855_v24 }
 0x317   :  { %v4683_v27 = vpop.eup %4682 }
 0x318   :  { %v863_v28 = vmul.f32 %v4683_v27, %v861_v26  ;;  %v4685_v40 = vpop.eup %4684 }
 0x319   :  { %v866_v31 = vsub.f32 1.0, %v4685_v40  ;;  %v870_v41 = vmul.f32 %v4685_v40, %v868_v46 }
 0x31a   :  { %v864_v30 = vadd.f32 %v863_v28, %v5158_v4 }
 0x31c   :  { %4686 = vtanh.f32 %v864_v30 }
 0x326   :  { %v4687_v35 = vpop.eup %4686 }
 0x327   :  { %v867_v36 = vmul.f32 %v4687_v35, %v866_v31 }
 0x329   :  { %v5243_v42 = vadd.f32 %v870_v41, %v867_v36 }
 0x32b   :  { %v873_v5 = vrot.slane %v5243_v42, 4 }
 0x32d   :  { %3569 = vmatmul.mubr.msk.f32.vlgmr.msra.gmra.mrb[6].mxu0 %vm353_vm5, %v873_v5  ;;  %3878 = vmatmul.mubr.msk.f32.vlgmr.msra.gmra.mrb[12].mxu1 %vm353_vm5, %v873_v5 }
 0x32e   :  { %4277 = vmatpush1.bf16.msra.mxu0 %v4932_v13  ;;  %4292 = vmatpush3.bf16.msra.mxu1 %v5027_v47 }
 0x32f   :  { %4279 = vmatprep.subr.bf16.mxu0 %v4944_v18  ;;  %4293 = vmatprep.subr.bf16.mxu1 %v4843_v48 }
 0x330   :  { %1117 = vmatprep.mubr.f32.mxu0 %v4842_v7  ;;  %3896 = vmatprep.mubr.msk.f32.mxu1 %vm4844_vm1, %v4842_v7 }
 0x332   :  { %4281 = vmatpush1.bf16.msra.mxu0 %v4963_v25  ;;  %4295 = vmatpush3.bf16.msra.mxu1 %v5040_v51 }
 0x333   :  { %4283 = vmatprep.subr.bf16.mxu0 %v4974_v29  ;;  %4296 = vmatprep.subr.bf16.mxu1 %v4843_v48 }
 0x336   :  { %4285 = vmatpush1.bf16.msra.mxu0 %v4989_v34  ;;  %4298 = vmatpush3.bf16.msra.mxu1 %v5055_v54 }
 0x337   :  { %4287 = vmatprep.subr.bf16.mxu0 %v5001_v38  ;;  %4299 = vmatprep.subr.bf16.mxu1 %v4843_v48 }
 0x33a   :  { %4289 = vmatpush1.bf16.msra.mxu0 %v5015_v44  ;;  %4301 = vmatpush3.bf16.msra.mxu1 %v5067_v57 }
 0x33b   :  { %4303 = vmatprep.subr.bf16.mxu0 %v4921_v8  ;;  %4318 = vmatprep.subr.bf16.mxu1 %v4843_v48 }
 0x400   :  { %v942_v4 = vpop.f32.mrb[6].mxu0  ;;  %v1013_v50 = vpop.f32.mrb[12].mxu1 }
 0x401   :  { %v943_v52 = vadd.f32 %v942_v4, %v5107_v16  ;;  %v944_v55 = vpop.f32.mrb[7].mxu0  ;;  %v3879_v56 = vpop.f32.mrb[13].mxu1  ;;  %v1014_v20 = vadd.f32 %v1013_v50, %v5174_v23 }
 0x402   :  { %v945_v59 = vadd.f32 %v944_v55, %v5110_v19 }
 0x403   :  { %v1019_v62 = vrot.slane %v943_v52, 2  ;;  %v1038_v24 = vrot.slane %v1014_v20, 2 }
 0x404   :  { %v1020_v0 = vrot.slane %v945_v59, 2 }
 0x405   :  { %v1023_v1 = vadd.f32 %v1019_v62, %v5139_v43 }
 0x406   :  { %v1024_v3 = vadd.f32 %v1020_v0, %v5148_v53  ;;  %v1045_v53 = vrot.slane %v5243_v42, 6 }
 0x407   :  { %v3571_v2 = vmul.f32 -1.442695, %v1023_v1 }
 0x408   :  { %v3572_v9 = vmul.f32 -1.442695, %v1024_v3 }
 0x409   :  { %4688 = vpow2.f32 %v3571_v2 }
 0x40a   :  { %4690 = vpow2.f32 %v3572_v9 }
 0x413   :  { %v4689_v14 = vpop.eup %4688 }
 0x414   :  { %v1031_v15 = vadd.f32 1.0, %v4689_v14  ;;  %v4691_v17 = vpop.eup %4690 }
 0x415   :  { %v1032_v21 = vadd.f32 1.0, %v4691_v17 }
 0x416   :  { %4692 = vrcp.f32 %v1031_v15 }
 0x417   :  { %4694 = vrcp.f32 %v1032_v21 }
 0x420   :  { %v4693_v26 = vpop.eup %4692 }
 0x421   :  { %v1040_v27 = vmul.f32 %v4693_v26, %v1038_v24  ;;  %v4695_v43 = vpop.eup %4694 }
 0x422   :  { %v1043_v30 = vsub.f32 1.0, %v4695_v43  ;;  %v1047_v35 = vmul.f32 %v4695_v43, %v1045_v53 }
 0x423   :  { %v1041_v28 = vadd.f32 %v1040_v27, %v5162_v6 }
 0x425   :  { %4696 = vtanh.f32 %v1041_v28 }
 0x42f   :  { %v4697_v40 = vpop.eup %4696 }
 0x430   :  { %v1044_v31 = vmul.f32 %v4697_v40, %v1043_v30 }
 0x432   :  { %v5274_v36 = vadd.f32 %v1047_v35, %v1044_v31 }
 0x434   :  { %v5277_v41 = vrot.slane %v5274_v36, 6 }
 0x436   :  { %3573 = vmatmul.mubr.msk.f32.vlgmr.msra.gmra.mrb[8].mxu0 %vm353_vm5, %v5277_v41  ;;  %3897 = vmatmul.mubr.msk.f32.vlgmr.msra.gmra.mrb[14].mxu1 %vm353_vm5, %v5277_v41 }
 0x437   :  { %4305 = vmatpush1.bf16.msra.mxu0 %v4932_v13  ;;  %4320 = vmatpush3.bf16.msra.mxu1 %v5027_v47 }
 0x438   :  { %4307 = vmatprep.subr.bf16.mxu0 %v4944_v18  ;;  %4321 = vmatprep.subr.bf16.mxu1 %v4843_v48 }
 0x439   :  { %1283 = vmatprep.mubr.f32.mxu0 %v4842_v7  ;;  %3915 = vmatprep.mubr.msk.f32.mxu1 %vm4844_vm1, %v4842_v7 }
 0x43b   :  { %4309 = vmatpush1.bf16.msra.mxu0 %v4963_v25  ;;  %4323 = vmatpush3.bf16.msra.mxu1 %v5040_v51 }
 0x43c   :  { %4311 = vmatprep.subr.bf16.mxu0 %v4974_v29  ;;  %4324 = vmatprep.subr.bf16.mxu1 %v4843_v48 }
 0x43f   :  { %4313 = vmatpush1.bf16.msra.mxu0 %v4989_v34  ;;  %4326 = vmatpush3.bf16.msra.mxu1 %v5055_v54 }
 0x440   :  { %4315 = vmatprep.subr.bf16.mxu0 %v5001_v38  ;;  %4327 = vmatprep.subr.bf16.mxu1 %v4843_v48 }
 0x443   :  { %4317 = vmatpush1.bf16.msra.mxu0 %v5015_v44  ;;  %4329 = vmatpush3.bf16.msra.mxu1 %v5067_v57 }
 0x444   :  { %4331 = vmatprep.subr.bf16.mxu0 %v4921_v8  ;;  %4346 = vmatprep.subr.bf16.mxu1 %v4843_v48 }
 0x509   :  { %v1119_v6 = vpop.f32.mrb[8].mxu0  ;;  %v1190_v5 = vpop.f32.mrb[14].mxu1 }
 0x50a   :  { %v1120_v4 = vadd.f32 %v1119_v6, %v5107_v16  ;;  %v1121_v50 = vpop.f32.mrb[9].mxu0  ;;  %v3898_v52 = vpop.f32.mrb[15].mxu1  ;;  %v1191_v14 = vadd.f32 %v1190_v5, %v5174_v23 }
 0x50b   :  { %v1122_v55 = vadd.f32 %v1121_v50, %v5110_v19 }
 0x50c   :  { %v1194_v56 = vadd.f32 %v1120_v4, %v5119_v32 }
 0x50d   :  { %v1195_v62 = vadd.f32 %v1122_v55, %v5127_v37 }
 0x50e   :  { %v3575_v59 = vmul.f32 -1.442695, %v1194_v56 }
 0x50f   :  { %v3576_v0 = vmul.f32 -1.442695, %v1195_v62 }
 0x510   :  { %4698 = vpow2.f32 %v3575_v59 }
 0x511   :  { %4700 = vpow2.f32 %v3576_v0 }
 0x51a   :  { %v4699_v1 = vpop.eup %4698 }
 0x51b   :  { %v1202_v2 = vadd.f32 1.0, %v4699_v1  ;;  %v4701_v3 = vpop.eup %4700 }
 0x51c   :  { %v1203_v9 = vadd.f32 1.0, %v4701_v3 }
 0x51d   :  { %4702 = vrcp.f32 %v1202_v2 }
 0x51e   :  { %4704 = vrcp.f32 %v1203_v9 }
 0x527   :  { %v4703_v15 = vpop.eup %4702 }
 0x528   :  { %v1208_v17 = vmul.f32 %v4703_v15, %v1191_v14  ;;  %v4705_v21 = vpop.eup %4704 }
 0x529   :  { %v1211_v24 = vsub.f32 1.0, %v4705_v21  ;;  %v1214_v28 = vmul.f32 %v4705_v21, %v5277_v41 }
 0x52a   :  { %v1209_v20 = vadd.f32 %v1208_v17, %v5167_v11 }
 0x52c   :  { %4706 = vtanh.f32 %v1209_v20 }
 0x536   :  { %v4707_v26 = vpop.eup %4706 }
 0x537   :  { %v1212_v27 = vmul.f32 %v4707_v26, %v1211_v24 }
 0x539   :  { %v5309_v43 = vadd.f32 %v1214_v28, %v1212_v27  ;;  %v1758_v28 = vrot.slane %v5243_v42, 2 }
 0x53b   :  { %3577 = vmatmul.mubr.msk.f32.vlgmr.msra.gmra.mrb[10].mxu0 %vm353_vm5, %v5309_v43  ;;  %3916 = vmatmul.mubr.msk.f32.vlgmr.msra.gmra.mrb[16].mxu1 %vm353_vm5, %v5309_v43  ;;  %v1388_v9 = vrot.slane %v5309_v43, 6 }
 0x53c   :  { %4333 = vmatpush1.bf16.msra.mxu0 %v4932_v13  ;;  %4348 = vmatpush3.bf16.msra.mxu1 %v5027_v47 }
 0x53d   :  { %4335 = vmatprep.subr.bf16.mxu0 %v4944_v18  ;;  %4349 = vmatprep.subr.bf16.mxu1 %v4843_v48 }
 0x53e   :  { %1460 = vmatprep.mubr.f32.mxu0 %v4842_v7  ;;  %3934 = vmatprep.mubr.msk.f32.mxu1 %vm4844_vm1, %v4842_v7 }
 0x540   :  { %4337 = vmatpush1.bf16.msra.mxu0 %v4963_v25  ;;  %4351 = vmatpush3.bf16.msra.mxu1 %v5040_v51 }
 0x541   :  { %4339 = vmatprep.subr.bf16.mxu0 %v4974_v29  ;;  %4352 = vmatprep.subr.bf16.mxu1 %v4843_v48 }
 0x544   :  { %4341 = vmatpush1.bf16.msra.mxu0 %v4989_v34  ;;  %4354 = vmatpush3.bf16.msra.mxu1 %v5055_v54 }
 0x545   :  { %4343 = vmatprep.subr.bf16.mxu0 %v5001_v38  ;;  %4355 = vmatprep.subr.bf16.mxu1 %v4843_v48 }
 0x548   :  { %4345 = vmatpush1.bf16.msra.mxu0 %v5015_v44  ;;  %4357 = vmatpush3.bf16.msra.mxu1 %v5067_v57 }
 0x549   :  { %4359 = vmatprep.subr.bf16.mxu0 %v4921_v8  ;;  %4374 = vmatprep.subr.bf16.mxu1 %v4843_v48 }
 0x60e   :  { %v1285_v30 = vpop.f32.mrb[10].mxu0  ;;  %v1356_v53 = vpop.f32.mrb[16].mxu1 }
 0x60f   :  { %v1286_v40 = vadd.f32 %v1285_v30, %v5107_v16  ;;  %v1287_v31 = vpop.f32.mrb[11].mxu0  ;;  %v3917_v35 = vpop.f32.mrb[17].mxu1  ;;  %v1357_v1 = vadd.f32 %v1356_v53, %v5174_v23  ;;  %v1757_v53 = vsel %vm76_vm2, %v5309_v43, %v5277_v41 }
 0x610   :  { %v1288_v6 = vadd.f32 %v1287_v31, %v5110_v19 }
 0x611   :  { %v1362_v5 = vrot.slane %v1286_v40, 6  ;;  %v1381_v2 = vrot.slane %v1357_v1, 6 }
 0x612   :  { %v1363_v4 = vrot.slane %v1288_v6, 6 }
 0x613   :  { %v1366_v50 = vadd.f32 %v1362_v5, %v5123_v33 }
 0x614   :  { %v1367_v52 = vadd.f32 %v1363_v4, %v5131_v39 }
 0x615   :  { %v3579_v55 = vmul.f32 -1.442695, %v1366_v50 }
 0x616   :  { %v3580_v56 = vmul.f32 -1.442695, %v1367_v52 }
 0x617   :  { %4708 = vpow2.f32 %v3579_v55 }
 0x618   :  { %4710 = vpow2.f32 %v3580_v56 }
 0x621   :  { %v4709_v8 = vpop.eup %4708 }
 0x622   :  { %v4711_v59 = vpop.eup %4710  ;;  %v1374_v62 = vadd.f32 1.0, %v4709_v8 }
 0x623   :  { %v1375_v0 = vadd.f32 1.0, %v4711_v59 }
 0x624   :  { %4712 = vrcp.f32 %v1374_v62 }
 0x625   :  { %4714 = vrcp.f32 %v1375_v0 }
 0x62e   :  { %v4713_v3 = vpop.eup %4712 }
 0x62f   :  { %v4715_v14 = vpop.eup %4714  ;;  %v1383_v15 = vmul.f32 %v4713_v3, %v1381_v2 }
 0x630   :  { %v1390_v17 = vmul.f32 %v4715_v14, %v1388_v9  ;;  %v1386_v21 = vsub.f32 1.0, %v4715_v14  ;;  %v1775_v14 = vld [vmem:[%s5938_s5 + $0x8] sm:$0xff] }
 0x631   :  { %v1384_v20 = vadd.f32 %v1383_v15, %v5171_v12  ;;  %v1778_v15 = vld [vmem:[%s5938_s5 + $0x20] sm:$0xff] }
 0x633   :  { %4716 = vtanh.f32 %v1384_v20  ;;  %v1777_v20 = vld [vmem:[%s5938_s5 + $0x18] sm:$0xff] }
 0x63d   :  { %v4717_v24 = vpop.eup %4716 }
 0x63e   :  { %v1387_v26 = vmul.f32 %v4717_v24, %v1386_v21  ;;  %v1776_v24 = vld [vmem:[%s5938_s5 + $0x10] sm:$0xff] }
 0x640   :  { %v5341_v27 = vadd.f32 %v1390_v17, %v1387_v26  ;;  %v4386_v17 = vpack.c.bf16 %v1778_v15, %v1775_v14  ;;  %v1779_v26 = vld [vmem:[%s5938_s5 + $0x28] sm:$0xff] }
 0x642   :  { %v1393_v30 = vrot.slane %v5341_v27, 2  ;;  %v1760_v40 = vsel %vm76_vm2, %v5341_v27, %v1758_v28  ;;  %v4402_v28 = vpack.c.bf16 %v1779_v26, %v1776_v24 }
 0x643   :  { %v1771_v31 = vsel %vm1765_vm6, %v1757_v53, %v1760_v40  ;;  %v1784_v53 = vld [vmem:[%s5938_s5 + $0x50] sm:$0xff] }
 0x644   :  { %3581 = vmatmul.mubr.msk.f32.vlgmr.msra.gmra.mrb[12].mxu0 %vm353_vm5, %v1393_v30  ;;  %3935 = vmatmul.mubr.msk.f32.vlgmr.msra.gmra.mrb[18].mxu1 %vm353_vm5, %v1393_v30  ;;  %v1781_v30 = vld [vmem:[%s5938_s5 + $0x38] sm:$0xff] }
 0x645   :  { %4361 = vmatpush1.bf16.msra.mxu0 %v4932_v13  ;;  %4376 = vmatpush3.bf16.msra.mxu1 %v5027_v47  ;;  %v4390_v40 = vpack.c.bf16 %v1784_v53, %v1781_v30 }
 0x646   :  { %4363 = vmatprep.subr.bf16.mxu0 %v4944_v18  ;;  %4377 = vmatprep.subr.bf16.mxu1 %v4843_v48 }
 0x647   :  { %1637 = vmatprep.mubr.f32.mxu0 %v4842_v7  ;;  %3953 = vmatprep.mubr.msk.f32.mxu1 %vm4844_vm1, %v4842_v7 }
 0x649   :  { %4365 = vmatpush1.bf16.msra.mxu0 %v4963_v25  ;;  %4379 = vmatpush3.bf16.msra.mxu1 %v5040_v51 }
 0x64a   :  { %4367 = vmatprep.subr.bf16.mxu0 %v4974_v29  ;;  %4380 = vmatprep.subr.bf16.mxu1 %v4843_v48 }
 0x64d   :  { %4369 = vmatpush1.bf16.msra.mxu0 %v4989_v34  ;;  %4382 = vmatpush3.bf16.msra.mxu1 %v5055_v54 }
 0x64e   :  { %4371 = vmatprep.subr.bf16.mxu0 %v5001_v38  ;;  %4383 = vmatprep.subr.bf16.mxu1 %v4843_v48 }
 0x651   :  { %4373 = vmatpush1.bf16.msra.mxu0 %v5015_v44  ;;  %4385 = vmatpush3.bf16.msra.mxu1 %v5067_v57 }
 0x652   :  { %4387 = vmatprep.subr.bf16.mxu0 %v4386_v17  ;;  %4403 = vmatprep.subr.bf16.mxu1 %v4402_v28 }
 0x717   :  { %v1462_v13 = vpop.f32.mrb[12].mxu0  ;;  %v1533_v18 = vpop.f32.mrb[18].mxu1 }
 0x718   :  { %v1463_v25 = vadd.f32 %v1462_v13, %v5107_v16  ;;  %v1464_v47 = vpop.f32.mrb[13].mxu0  ;;  %v3936_v29 = vpop.f32.mrb[19].mxu1  ;;  %v1534_v4 = vadd.f32 %v1533_v18, %v5174_v23  ;;  %v1783_v13 = vld [vmem:[%s5938_s5 + $0x48] sm:$0xff] }
 0x719   :  { %v1465_v51 = vadd.f32 %v1464_v47, %v5110_v19  ;;  %v1785_v47 = vld [vmem:[%s5938_s5 + $0x58] sm:$0xff] }
 0x71a   :  { %v1539_v41 = vrot.slane %v1463_v25, 4  ;;  %v1558_v52 = vrot.slane %v1534_v4, 4  ;;  %v1782_v25 = vld [vmem:[%s5938_s5 + $0x40] sm:$0xff]  ;;  %v1796_v4 = vld [vmem:[%s5938_s5 + $0xb0] sm:$0xff] }
 0x71b   :  { %v1540_v34 = vrot.slane %v1465_v51, 4  ;;  %v4406_v29 = vpack.c.bf16 %v1785_v47, %v1782_v25  ;;  %v1787_v51 = vld [vmem:[%s5938_s5 + $0x68] sm:$0xff] }
 0x71c   :  { %v1543_v54 = vadd.f32 %v1539_v41, %v5119_v32  ;;  %v1790_v41 = vld [vmem:[%s5938_s5 + $0x80] sm:$0xff] }
 0x71d   :  { %v1544_v38 = vadd.f32 %v1540_v34, %v5127_v37  ;;  %v1565_v37 = vrot.slane %v5341_v27, 6  ;;  %v4394_v34 = vpack.c.bf16 %v1790_v41, %v1787_v51  ;;  %v1996_v27 = vld [vmem:[%s5940_s7 + $0x30] sm:$0xff] }
 0x71e   :  { %v3583_v35 = vmul.f32 -1.442695, %v1543_v54  ;;  %v1786_v54 = vld [vmem:[%s5938_s5 + $0x60] sm:$0xff] }
 0x71f   :  { %v3584_v6 = vmul.f32 -1.442695, %v1544_v38 }
 0x720   :  { %4718 = vpow2.f32 %v3583_v35  ;;  %v1789_v35 = vld [vmem:[%s5938_s5 + $0x78] sm:$0xff] }
 0x721   :  { %4720 = vpow2.f32 %v3584_v6  ;;  %v4396_v38 = vpack.c.bf16 %v1789_v35, %v1786_v54  ;;  %v1788_v6 = vld [vmem:[%s5938_s5 + $0x70] sm:$0xff] }
 0x72a   :  { %v4719_v44 = vpop.eup %4718 }
 0x72b   :  { %v1551_v57 = vadd.f32 1.0, %v4719_v44  ;;  %v4721_v5 = vpop.eup %4720  ;;  %v1791_v44 = vld [vmem:[%s5938_s5 + $0x88] sm:$0xff] }
 0x72c   :  { %v1552_v50 = vadd.f32 1.0, %v4721_v5  ;;  %v4410_v5 = vpack.c.bf16 %v1791_v44, %v1788_v6  ;;  %v1754_v6 = vrot.slane %v5309_v43, 2  ;;  %v1990_v44 = vld [vmem:[%s5940_s7] sm:$0xff]  ;;  %v2000_v43 = vld [vmem:[%s5940_s7 + $0x50] sm:$0xff] }
 0x72d   :  { %4722 = vrcp.f32 %v1551_v57  ;;  %v1793_v57 = vld [vmem:[%s5938_s5 + $0x98] sm:$0xff] }
 0x72e   :  { %4724 = vrcp.f32 %v1552_v50  ;;  %v1792_v50 = vld [vmem:[%s5938_s5 + $0x90] sm:$0xff] }
 0x737   :  { %v4723_v55 = vpop.eup %4722 }
 0x738   :  { %v1560_v56 = vmul.f32 %v4723_v55, %v1558_v52  ;;  %v4725_v32 = vpop.eup %4724  ;;  %v1795_v52 = vld [vmem:[%s5938_s5 + $0xa8] sm:$0xff]  ;;  %v4398_v55 = vpack.c.bf16 %v1796_v4, %v1793_v57 }
 0x739   :  { %v1563_v59 = vsub.f32 1.0, %v4725_v32  ;;  %v1567_v1 = vmul.f32 %v4725_v32, %v1565_v37  ;;  %v1797_v32 = vld [vmem:[%s5938_s5 + $0xb8] sm:$0xff] }
 0x73a   :  { %v1561_v8 = vadd.f32 %v1560_v56, %v5167_v11  ;;  %v4400_v56 = vpack.c.bf16 %v1795_v52, %v1792_v50  ;;  %v1995_v52 = vld [vmem:[%s5940_s7 + $0x28] sm:$0xff] }
 0x73c   :  { %4726 = vtanh.f32 %v1561_v8  ;;  %v1794_v8 = vld [vmem:[%s5938_s5 + $0xa0] sm:$0xff] }
 0x746   :  { %v4727_v62 = vpop.eup %4726 }
 0x747   :  { %v1564_v0 = vmul.f32 %v4727_v62, %v1563_v59  ;;  %v1991_v59 = vld [vmem:[%s5940_s7 + $0x8] sm:$0xff]  ;;  %v4414_v62 = vpack.c.bf16 %v1797_v32, %v1794_v8 }
 0x749   :  { %v5381_v2 = vadd.f32 %v1567_v1, %v1564_v0  ;;  %v1994_v0 = vld [vmem:[%s5940_s7 + $0x20] sm:$0xff] }
 0x74a   :  { %v5473_v1 = vpack.c.bf16 %v1994_v0, %v1991_v59  ;;  %v2003_v59 = vld [vmem:[%s5940_s7 + $0x68] sm:$0xff]  ;;  %v1998_v0 = vld [vmem:[%s5940_s7 + $0x40] sm:$0xff] }
 0x74b   :  { %v1570_v3 = vrot.slane %v5381_v2, 4  ;;  %v1761_v11 = vsel %vm76_vm2, %v5381_v2, %v868_v46  ;;  %v1774_v46 = vld [vmem:[%s5938_s5] sm:$0xff]  ;;  %v1742_v25 = vrot.slane %v5381_v2, 6  ;;  %v1750_v35 = vrot.slane %v5381_v2, 2 }
 0x74c   :  { %v5390_v9 = vsel %vm1767_vm7, %v1771_v31, %v1761_v11  ;;  %v4388_v21 = vpack.c.bf16 %v1777_v20, %v1774_v46  ;;  %v1780_v31 = vld [vmem:[%s5938_s5 + $0x30] sm:$0xff] }
 0x74d   :  { %3585 = vmatmul.mubr.msk.f32.vlgmr.msra.gmra.mrb[14].mxu0 %vm353_vm5, %v1570_v3  ;;  %3954 = vmatmul.mubr.msk.f32.vlgmr.msra.gmra.mrb[20].mxu1 %vm353_vm5, %v1570_v3  ;;  %v4392_v18 = vpack.c.bf16 %v1783_v13, %v1780_v31  ;;  %v1752_v50 = vsel %vm76_vm2, %v5210_v45, %v1750_v35  ;;  %v1756_v45 = vsel %vm76_vm2, %v5274_v36, %v1754_v6  ;;  %v2006_v36 = vld [vmem:[%s5940_s7 + $0x80] sm:$0xff] }
 0x74e   :  { %1885 = vmatprep.mubr.f32.mxu0 %v4842_v7  ;;  %4389 = vmatpush1.bf16.msra.mxu0 %v4388_v21 }
 0x74f   :  { %4405 = vmatpush3.bf16.msra.mxu1 %v4402_v28  ;;  %4391 = vmatprep.subr.bf16.mxu0 %v4390_v40 }
 0x750   :  { %4407 = vmatprep.subr.bf16.mxu1 %v4406_v29 }
 0x752   :  { %4393 = vmatpush1.bf16.msra.mxu0 %v4392_v18 }
 0x753   :  { %4409 = vmatpush3.bf16.msra.mxu1 %v4406_v29  ;;  %4395 = vmatprep.subr.bf16.mxu0 %v4394_v34 }
 0x754   :  { %4411 = vmatprep.subr.bf16.mxu1 %v4410_v5 }
 0x756   :  { %4397 = vmatpush1.bf16.msra.mxu0 %v4396_v38  ;;  %v1762_v38 = vrot.slane %v5178_v49, 2 }
 0x757   :  { %4413 = vmatpush3.bf16.msra.mxu1 %v4410_v5  ;;  %4399 = vmatprep.subr.bf16.mxu0 %v4398_v55  ;;  %v1997_v5 = vld [vmem:[%s5940_s7 + $0x38] sm:$0xff]  ;;  %v1753_v55 = vsel %vm76_vm2, %v5243_v42, %v1565_v37  ;;  %v1999_v42 = vld [vmem:[%s5940_s7 + $0x48] sm:$0xff] }
 0x758   :  { %4415 = vmatprep.subr.bf16.mxu1 %v4414_v62  ;;  %v5527_v32 = vpack.c.bf16 %v2000_v43, %v1997_v5 }
 0x75a   :  { %4401 = vmatpush1.bf16.msra.mxu0 %v4400_v56 }
 0x75b   :  { %4419 = vmatprep.subr.bf16.mxu0 %v5473_v1  ;;  %4417 = vmatpush3.bf16.msra.mxu1 %v4414_v62 }
 0x75c   :  { %4434 = vmatprep.subr.bf16.mxu1 %v4843_v48 }
 0x820   :  { %v1639_v3 = vpop.f32.mrb[14].mxu0  ;;  %v1710_v11 = vpop.f32.mrb[20].mxu1 }
 0x821   :  { %v1640_v14 = vadd.f32 %v1639_v3, %v5107_v16  ;;  %v1641_v15 = vpop.f32.mrb[15].mxu0  ;;  %v3955_v17 = vpop.f32.mrb[21].mxu1  ;;  %v1711_v16 = vadd.f32 %v1710_v11, %v5174_v23  ;;  %v2001_v3 = vld [vmem:[%s5940_s7 + $0x58] sm:$0xff]  ;;  %v5554_v11 = vpack.c.bf16 %v1999_v42, %v1996_v27 }
 0x822   :  { %v1642_v46 = vadd.f32 %v1641_v15, %v5110_v19  ;;  %v2002_v15 = vld [vmem:[%s5940_s7 + $0x60] sm:$0xff]  ;;  %v2005_v17 = vld [vmem:[%s5940_s7 + $0x78] sm:$0xff] }
 0x823   :  { %v1716_v20 = vrot.slane %v1640_v14, 2  ;;  %v1735_v18 = vrot.slane %v1711_v16, 2  ;;  %v5558_v14 = vpack.c.bf16 %v2006_v36, %v2003_v59  ;;  %v2013_v16 = vld [vmem:[%s5940_s7 + $0xb8] sm:$0xff] }
 0x824   :  { %v1717_v21 = vrot.slane %v1642_v46, 2  ;;  %v2009_v46 = vld [vmem:[%s5940_s7 + $0x98] sm:$0xff] }
 0x825   :  { %v1720_v24 = vadd.f32 %v1716_v20, %v5123_v33  ;;  %v2012_v20 = vld [vmem:[%s5940_s7 + $0xb0] sm:$0xff] }
 0x826   :  { %v1721_v26 = vadd.f32 %v1717_v21, %v5131_v39  ;;  %v5573_v21 = vpack.c.bf16 %v2001_v3, %v1998_v0 }
 0x827   :  { %v3587_v28 = vmul.f32 -1.442695, %v1720_v24  ;;  %v2004_v24 = vld [vmem:[%s5940_s7 + $0x70] sm:$0xff] }
 0x828   :  { %v3588_v30 = vmul.f32 -1.442695, %v1721_v26  ;;  %v2007_v26 = vld [vmem:[%s5940_s7 + $0x88] sm:$0xff] }
 0x829   :  { %4728 = vpow2.f32 %v3587_v28  ;;  %v5586_v28 = vpack.c.bf16 %v2005_v17, %v2002_v15 }
 0x82a   :  { %4730 = vpow2.f32 %v3588_v30  ;;  %v5590_v30 = vpack.c.bf16 %v2012_v20, %v2009_v46 }
 0x833   :  { %v4729_v53 = vpop.eup %4728 }
 0x834   :  { %v4731_v40 = vpop.eup %4730  ;;  %v1728_v31 = vadd.f32 1.0, %v4729_v53  ;;  %v2008_v53 = vld [vmem:[%s5940_s7 + $0x90] sm:$0xff] }
 0x835   :  { %v1729_v13 = vadd.f32 1.0, %v4731_v40  ;;  %v2011_v40 = vld [vmem:[%s5940_s7 + $0xa8] sm:$0xff] }
 0x836   :  { %4732 = vrcp.f32 %v1728_v31  ;;  %v5599_v31 = vpack.c.bf16 %v2007_v26, %v2004_v24  ;;  %v1973_v24 = vld [vmem:[%s5941_s8] sm:$0x7] }
 0x837   :  { %4734 = vrcp.f32 %v1729_v13  ;;  %v2010_v13 = vld [vmem:[%s5940_s7 + $0xa0] sm:$0xff]  ;;  %v5699_v58 = vrot.slane %v1973_v24, %v5089_v61 }
 0x840   :  { %v4733_v19 = vpop.eup %4732 }
 0x841   :  { %v4735_v47 = vpop.eup %4734  ;;  %v1737_v33 = vmul.f32 %v4733_v19, %v1735_v18  ;;  %v5609_v18 = vpack.c.bf16 %v2011_v40, %v2008_v53  ;;  %v5613_v19 = vpack.c.bf16 %v2013_v16, %v2010_v13  ;;  %v5702_v53 = vrot.slane %v1973_v24, %v5094_v63 }
 0x842   :  { %v1744_v29 = vmul.f32 %v4735_v47, %v1742_v25  ;;  %v1740_v51 = vsub.f32 1.0, %v4735_v47  ;;  %v1798_v25 = vld [vmem:[%s5939_s6] sm:$0x7] }
 0x843   :  { %v1738_v39 = vadd.f32 %v1737_v33, %v5171_v12  ;;  %v1993_v12 = vld [vmem:[%s5940_s7 + $0x18] sm:$0xff]  ;;  %v1803_v47 = vrot.slane %v1798_v25, %v5089_v61  ;;  %v1807_v33 = vrot.slane %v1798_v25, %v5094_v63  ;;  %v5709_v63 = vrot.slane %v1973_v24, %v5102_v10 }
 0x844   :  { %v5521_v56 = vpack.c.bf16 %v1993_v12, %v1990_v44 }
 0x845   :  { %4736 = vtanh.f32 %v1738_v39 }
 0x84f   :  { %v4737_v41 = vpop.eup %4736 }
 0x850   :  { %v1741_v34 = vmul.f32 %v4737_v41, %v1740_v51 }
 0x852   :  { %v1745_v54 = vadd.f32 %v1744_v29, %v1741_v34  ;;  %v1811_v29 = vrot.slane %v1798_v25, %v5102_v10 }
 0x854   :  { %v1747_v23 = vrot.slane %v1745_v54, 6  ;;  %v1764_v57 = vsel %vm76_vm2, %v1745_v54, %v1762_v38 }
 0x855   :  { %v1773_v2 = vsel %vm1769_vm8, %v5390_v9, %v1764_v57  ;;  %v1992_v9 = vld [vmem:[%s5940_s7 + $0x10] sm:$0xff] }
 0x856   :  { %v1749_v4 = vsel %vm76_vm2, %v5178_v49, %v1747_v23  ;;  %v5542_v62 = vpack.c.bf16 %v1995_v52, %v1992_v9 }
 0x857   :  { %v1766_v49 = vsel %vm1765_vm6, %v1749_v4, %v1752_v50 }
 0x858   :  { %v1768_v8 = vsel %vm1767_vm7, %v1766_v49, %v1753_v55 }
 0x859   :  { %v1770_v37 = vsel %vm1769_vm8, %v1768_v8, %v1756_v45 }
 0x85a   :  { %3589 = vmatmul.mubr.msk.f32.vlgmr.msra.gmra.mrb[16].mxu0 %vm353_vm5, %v1770_v37  ;;  %3972 = vmatprep.mubr.msk.f32.mxu1 %vm353_vm5, %v1770_v37 }
 0x85b   :  { %4421 = vmatpush1.bf16.msra.mxu0 %v5521_v56  ;;  %3973 = vmatmul.mubr.msk.f32.vlgmr.msra.gmra.mrb[22].mxu1 %vm353_vm5, %v1773_v2 }
 0x85c   :  { %1891 = vmatprep.mubr.f32.mxu0 %v4842_v7  ;;  %4423 = vmatprep.subr.bf16.mxu0 %v5527_v32 }
 0x85d   :  { %4436 = vmatpush3.bf16.msra.mxu1 %v5542_v62  ;;  %3991 = vmatprep.mubr.msk.f32.mxu1 %vm4844_vm1, %v4842_v7 }
 0x85e   :  { %3590 = vmatmul.mubr.msk.f32.gmra.mrb[18].mxu0 %vm353_vm5, %v1773_v2  ;;  %4437 = vmatprep.subr.bf16.mxu1 %v4843_v48 }
 0x85f   :  { %4425 = vmatpush1.bf16.msra.mxu0 %v5554_v11  ;;  %2120 = vmatprep.mubr.f32.mxu0 %v4842_v7 }
 0x860   :  { %4427 = vmatprep.subr.bf16.mxu0 %v5558_v14 }
 0x861   :  { %4439 = vmatpush3.bf16.msra.mxu1 %v5573_v21 }
 0x862   :  { %4440 = vmatprep.subr.bf16.mxu1 %v4843_v48 }
 0x863   :  { %4429 = vmatpush1.bf16.msra.mxu0 %v5586_v28 }
 0x864   :  { %4431 = vmatprep.subr.bf16.mxu0 %v5590_v30 }
 0x865   :  { %4442 = vmatpush3.bf16.msra.mxu1 %v5599_v31 }
 0x866   :  { %4443 = vmatprep.subr.bf16.mxu1 %v4843_v48 }
 0x867   :  { %4433 = vmatpush1.bf16.msra.mxu0 %v5609_v18 }
 0x868   :  { %4447 = vmatprep.subr.bf16.mxu0 %v5473_v1 }
 0x869   :  { %4445 = vmatpush3.bf16.msra.mxu1 %v5613_v19 }
 0x86a   :  { %2121 = vmatmul.mubr.f32.vlgmr.msra.gmra.mrb[20].mxu0 %v4842_v7  ;;  %4462 = vmatprep.subr.bf16.mxu1 %v4843_v48 }
 0x86b   :  { %4449 = vmatpush1.bf16.msra.mxu0 %v5521_v56  ;;  %2285 = vmatprep.mubr.f32.mxu0 %v4842_v7 }
 0x86c   :  { %3992 = vmatmul.mubr.f32.vlgmr.msra.gmra.mrb[24].mxu1 %v4842_v7  ;;  %4451 = vmatprep.subr.bf16.mxu0 %v5527_v32 }
 0x86d   :  { %4464 = vmatpush3.bf16.msra.mxu1 %v5542_v62  ;;  %4010 = vmatprep.mubr.msk.f32.mxu1 %vm4844_vm1, %v4842_v7 }
 0x86e   :  { %4465 = vmatprep.subr.bf16.mxu1 %v4843_v48 }
 0x86f   :  { %4453 = vmatpush1.bf16.msra.mxu0 %v5554_v11 }
 0x870   :  { %4455 = vmatprep.subr.bf16.mxu0 %v5558_v14 }
 0x871   :  { %4467 = vmatpush3.bf16.msra.mxu1 %v5573_v21 }
 0x872   :  { %4468 = vmatprep.subr.bf16.mxu1 %v4843_v48 }
 0x873   :  { %4457 = vmatpush1.bf16.msra.mxu0 %v5586_v28 }
 0x874   :  { %4459 = vmatprep.subr.bf16.mxu0 %v5590_v30 }
 0x875   :  { %4470 = vmatpush3.bf16.msra.mxu1 %v5599_v31 }
 0x876   :  { %4471 = vmatprep.subr.bf16.mxu1 %v4843_v48 }
 0x877   :  { %4461 = vmatpush1.bf16.msra.mxu0 %v5609_v18 }
 0x878   :  { %4475 = vmatprep.subr.bf16.mxu0 %v5473_v1 }
 0x879   :  { %4473 = vmatpush3.bf16.msra.mxu1 %v5613_v19 }
 0x87a   :  { %4490 = vmatprep.subr.bf16.mxu1 %v4843_v48 }
 0x92d   :  { %v1887_v39 = vpop.f32.mrb[16].mxu0 }
 0x92e   :  { %v1888_v51 = vadd.f32 %v1887_v39, %v1803_v47  ;;  %v1889_v41 = vpop.f32.mrb[17].mxu0  ;;  %v3974_v34 = vpop.f32.mrb[22].mxu1 }
 0x92f   :  { %v1890_v54 = vadd.f32 %v1889_v41, %v1807_v33  ;;  %v1970_v35 = vadd.f32 %v3974_v34, %v1811_v29  ;;  %v1964_v38 = vpop.f32.mrb[23].mxu1 }
 0x930   :  { %v1965_v23 = vadd.f32 %v1964_v38, %v1811_v29  ;;  %v2038_v57 = vrot.slane %v1888_v51, 6  ;;  %v2047_v2 = vrot.slane %v1888_v51, 2 }
 0x931   :  { %v2019_v6 = vrot.slane %v1970_v35, 6  ;;  %v2028_v44 = vrot.slane %v1970_v35, 2  ;;  %v1893_v12 = vpop.f32.mrb[18].mxu0  ;;  %v2039_v9 = vrot.slane %v1890_v54, 6  ;;  %v2048_v45 = vrot.slane %v1890_v54, 2 }
 0x932   :  { %v2040_v5 = vrot.slane %v1965_v23, 6  ;;  %v2049_v43 = vrot.slane %v1965_v23, 2  ;;  %v1894_v4 = vadd.f32 %v1893_v12, %v1803_v47  ;;  %v1895_v50 = vpop.f32.mrb[19].mxu0 }
 0x933   :  { %v1896_v52 = vadd.f32 %v1895_v50, %v1807_v33  ;;  %v5649_v55 = vsel %vm5151_vm4, %v1965_v23, %v2019_v6  ;;  %v5653_v49 = vsel %vm5151_vm4, %v1965_v23, %v2028_v44 }
 0x934   :  { %v2017_v8 = vrot.slane %v1894_v4, 6  ;;  %v2026_v27 = vrot.slane %v1894_v4, 2  ;;  %v5657_v42 = vsel %vm76_vm2, %v1894_v4, %v2038_v57  ;;  %v5661_v37 = vsel %vm5151_vm4, %v1970_v35, %v2040_v5 }
 0x935   :  { %v2018_v59 = vrot.slane %v1896_v52, 6  ;;  %v2027_v36 = vrot.slane %v1896_v52, 2  ;;  %v5665_v0 = vsel %vm5112_vm3, %v1896_v52, %v2039_v9  ;;  %v5669_v3 = vsel %vm76_vm2, %v1894_v4, %v2047_v2 }
 0x936   :  { %v5673_v15 = vsel %vm76_vm2, %v1888_v51, %v2017_v8  ;;  %v5677_v17 = vsel %vm76_vm2, %v1888_v51, %v2026_v27  ;;  %v5681_v46 = vsel %vm5151_vm4, %v1970_v35, %v2049_v43  ;;  %v5685_v20 = vsel %vm5112_vm3, %v1896_v52, %v2048_v45 }
 0x937   :  { %v5692_v26 = vsel %vm5112_vm3, %v1890_v54, %v2018_v59  ;;  %v5696_v60 = vsel %vm5112_vm3, %v1890_v54, %v2027_v36 }
 0x93d   :  { %v2122_v40 = vpop.f32.mrb[20].mxu0 }
 0x93e   :  { %v2123_v13 = vadd.f32 %v2122_v40, %v5699_v58  ;;  %v2124_v16 = vpop.f32.mrb[21].mxu0 }
 0x93f   :  { %v2125_v25 = vadd.f32 %v2124_v16, %v5702_v53  ;;  %v2193_v47 = vpop.f32.mrb[24].mxu1 }
 0x940   :  { %v2197_v33 = vadd.f32 %v2123_v13, %v5673_v15  ;;  %v3993_v29 = vpop.f32.mrb[25].mxu1  ;;  %v2194_v35 = vadd.f32 %v2193_v47, %v5709_v63 }
 0x941   :  { %v2198_v22 = vadd.f32 %v2125_v25, %v5692_v26 }
 0x942   :  { %v3593_v39 = vmul.f32 -1.442695, %v2197_v33 }
 0x943   :  { %v3594_v51 = vmul.f32 -1.442695, %v2198_v22 }
 0x944   :  { %4738 = vpow2.f32 %v3593_v39 }
 0x945   :  { %4740 = vpow2.f32 %v3594_v51 }
 0x94e   :  { %v4739_v61 = vpop.eup %4738 }
 0x94f   :  { %v2205_v41 = vadd.f32 1.0, %v4739_v61  ;;  %v4741_v34 = vpop.eup %4740 }
 0x950   :  { %v2206_v54 = vadd.f32 1.0, %v4741_v34 }
 0x951   :  { %4742 = vrcp.f32 %v2205_v41 }
 0x952   :  { %4744 = vrcp.f32 %v2206_v54 }
 0x95b   :  { %v4743_v38 = vpop.eup %4742 }
 0x95c   :  { %v2211_v23 = vmul.f32 %v4743_v38, %v2194_v35  ;;  %v4745_v44 = vpop.eup %4744 }
 0x95d   :  { %v2214_v12 = vsub.f32 1.0, %v4745_v44  ;;  %v2216_v5 = vmul.f32 0.0, %v4745_v44 }
 0x95e   :  { %v2212_v6 = vadd.f32 %v2211_v23, %v5649_v55 }
 0x960   :  { %4746 = vtanh.f32 %v2212_v6 }
 0x96a   :  { %v4747_v57 = vpop.eup %4746 }
 0x96b   :  { %v2215_v2 = vmul.f32 %v4747_v57, %v2214_v12 }
 0x96d   :  { %v5713_v43 = vadd.f32 %v2216_v5, %v2215_v2 }
 0x96f   :  { %3595 = vmatmul.mubr.msk.f32.vlgmr.msra.gmra.mrb[22].mxu0 %vm353_vm5, %v5713_v43  ;;  %4011 = vmatmul.mubr.msk.f32.vlgmr.msra.gmra.mrb[26].mxu1 %vm353_vm5, %v5713_v43  ;;  %v2390_v34 = vrot.slane %v5713_v43, 6 }
 0x970   :  { %4477 = vmatpush1.bf16.msra.mxu0 %v5521_v56  ;;  %4492 = vmatpush3.bf16.msra.mxu1 %v5542_v62 }
 0x971   :  { %4479 = vmatprep.subr.bf16.mxu0 %v5527_v32  ;;  %4493 = vmatprep.subr.bf16.mxu1 %v4843_v48 }
 0x972   :  { %2462 = vmatprep.mubr.f32.mxu0 %v4842_v7  ;;  %4029 = vmatprep.mubr.msk.f32.mxu1 %vm4844_vm1, %v4842_v7 }
 0x974   :  { %4481 = vmatpush1.bf16.msra.mxu0 %v5554_v11  ;;  %4495 = vmatpush3.bf16.msra.mxu1 %v5573_v21 }
 0x975   :  { %4483 = vmatprep.subr.bf16.mxu0 %v5558_v14  ;;  %4496 = vmatprep.subr.bf16.mxu1 %v4843_v48 }
 0x978   :  { %4485 = vmatpush1.bf16.msra.mxu0 %v5586_v28  ;;  %4498 = vmatpush3.bf16.msra.mxu1 %v5599_v31 }
 0x979   :  { %4487 = vmatprep.subr.bf16.mxu0 %v5590_v30  ;;  %4499 = vmatprep.subr.bf16.mxu1 %v4843_v48 }
 0x97c   :  { %4489 = vmatpush1.bf16.msra.mxu0 %v5609_v18  ;;  %4501 = vmatpush3.bf16.msra.mxu1 %v5613_v19 }
 0x97d   :  { %4503 = vmatprep.subr.bf16.mxu0 %v5473_v1  ;;  %4518 = vmatprep.subr.bf16.mxu1 %v4843_v48 }
 0xa42   :  { %v2287_v10 = vpop.f32.mrb[22].mxu0  ;;  %v2358_v4 = vpop.f32.mrb[26].mxu1 }
 0xa43   :  { %v2288_v50 = vadd.f32 %v2287_v10, %v5699_v58  ;;  %v2289_v9 = vpop.f32.mrb[23].mxu0  ;;  %v4012_v52 = vpop.f32.mrb[27].mxu1  ;;  %v2359_v47 = vadd.f32 %v2358_v4, %v5709_v63 }
 0xa44   :  { %v2290_v45 = vadd.f32 %v2289_v9, %v5702_v53 }
 0xa45   :  { %v2364_v8 = vrot.slane %v2288_v50, 6  ;;  %v2383_v29 = vrot.slane %v2359_v47, 6 }
 0xa46   :  { %v2365_v27 = vrot.slane %v2290_v45, 6 }
 0xa47   :  { %v2368_v59 = vadd.f32 %v2364_v8, %v5677_v17 }
 0xa48   :  { %v2369_v24 = vadd.f32 %v2365_v27, %v5696_v60 }
 0xa49   :  { %v3597_v36 = vmul.f32 -1.442695, %v2368_v59 }
 0xa4a   :  { %v3598_v40 = vmul.f32 -1.442695, %v2369_v24 }
 0xa4b   :  { %4748 = vpow2.f32 %v3597_v36 }
 0xa4c   :  { %4750 = vpow2.f32 %v3598_v40 }
 0xa55   :  { %v4749_v13 = vpop.eup %4748 }
 0xa56   :  { %v2376_v16 = vadd.f32 1.0, %v4749_v13  ;;  %v4751_v25 = vpop.eup %4750 }
 0xa57   :  { %v2377_v33 = vadd.f32 1.0, %v4751_v25 }
 0xa58   :  { %4752 = vrcp.f32 %v2376_v16 }
 0xa59   :  { %4754 = vrcp.f32 %v2377_v33 }
 0xa62   :  { %v4753_v39 = vpop.eup %4752 }
 0xa63   :  { %v2385_v22 = vmul.f32 %v4753_v39, %v2383_v29  ;;  %v4755_v61 = vpop.eup %4754 }
 0xa64   :  { %v2388_v41 = vsub.f32 1.0, %v4755_v61  ;;  %v2392_v38 = vmul.f32 %v4755_v61, %v2390_v34 }
 0xa65   :  { %v2386_v51 = vadd.f32 %v2385_v22, %v5653_v49 }
 0xa67   :  { %4756 = vtanh.f32 %v2386_v51 }
 0xa71   :  { %v4757_v54 = vpop.eup %4756 }
 0xa72   :  { %v2389_v35 = vmul.f32 %v4757_v54, %v2388_v41 }
 0xa74   :  { %v2393_v23 = vadd.f32 %v2392_v38, %v2389_v35 }
 0xa76   :  { %v2395_v6 = vrot.slane %v2393_v23, 2  ;;  %v2567_v25 = vrot.slane %v2393_v23, 6 }
 0xa78   :  { %3599 = vmatmul.mubr.msk.f32.vlgmr.msra.gmra.mrb[24].mxu0 %vm353_vm5, %v2395_v6  ;;  %4030 = vmatmul.mubr.msk.f32.vlgmr.msra.gmra.mrb[28].mxu1 %vm353_vm5, %v2395_v6  ;;  %v3446_v61 = vadd.f32 %v2395_v6, %v5713_v43 }
 0xa79   :  { %4505 = vmatpush1.bf16.msra.mxu0 %v5521_v56  ;;  %4520 = vmatpush3.bf16.msra.mxu1 %v5542_v62 }
 0xa7a   :  { %4507 = vmatprep.subr.bf16.mxu0 %v5527_v32  ;;  %4521 = vmatprep.subr.bf16.mxu1 %v4843_v48 }
 0xa7b   :  { %2639 = vmatprep.mubr.f32.mxu0 %v4842_v7  ;;  %4048 = vmatprep.mubr.msk.f32.mxu1 %vm4844_vm1, %v4842_v7 }
 0xa7d   :  { %4509 = vmatpush1.bf16.msra.mxu0 %v5554_v11  ;;  %4523 = vmatpush3.bf16.msra.mxu1 %v5573_v21 }
 0xa7e   :  { %4511 = vmatprep.subr.bf16.mxu0 %v5558_v14  ;;  %4524 = vmatprep.subr.bf16.mxu1 %v4843_v48 }
 0xa81   :  { %4513 = vmatpush1.bf16.msra.mxu0 %v5586_v28  ;;  %4526 = vmatpush3.bf16.msra.mxu1 %v5599_v31 }
 0xa82   :  { %4515 = vmatprep.subr.bf16.mxu0 %v5590_v30  ;;  %4527 = vmatprep.subr.bf16.mxu1 %v4843_v48 }
 0xa85   :  { %4517 = vmatpush1.bf16.msra.mxu0 %v5609_v18  ;;  %4529 = vmatpush3.bf16.msra.mxu1 %v5613_v19 }
 0xa86   :  { %4531 = vmatprep.subr.bf16.mxu0 %v5473_v1  ;;  %4546 = vmatprep.subr.bf16.mxu1 %v4843_v48 }
 0xb4b   :  { %v2464_v44 = vpop.f32.mrb[24].mxu0  ;;  %v2535_v12 = vpop.f32.mrb[28].mxu1 }
 0xb4c   :  { %v2465_v57 = vadd.f32 %v2464_v44, %v5699_v58  ;;  %v2466_v2 = vpop.f32.mrb[25].mxu0  ;;  %v4031_v5 = vpop.f32.mrb[29].mxu1  ;;  %v2536_v40 = vadd.f32 %v2535_v12, %v5709_v63 }
 0xb4d   :  { %v2467_v10 = vadd.f32 %v2466_v2, %v5702_v53 }
 0xb4e   :  { %v2541_v4 = vrot.slane %v2465_v57, 4  ;;  %v2560_v13 = vrot.slane %v2536_v40, 4 }
 0xb4f   :  { %v2542_v50 = vrot.slane %v2467_v10, 4 }
 0xb50   :  { %v2545_v9 = vadd.f32 %v2541_v4, %v5673_v15 }
 0xb51   :  { %v2546_v52 = vadd.f32 %v2542_v50, %v5692_v26 }
 0xb52   :  { %v3601_v45 = vmul.f32 -1.442695, %v2545_v9 }
 0xb53   :  { %v3602_v8 = vmul.f32 -1.442695, %v2546_v52 }
 0xb54   :  { %4758 = vpow2.f32 %v3601_v45 }
 0xb55   :  { %4760 = vpow2.f32 %v3602_v8 }
 0xb5e   :  { %v4759_v27 = vpop.eup %4758 }
 0xb5f   :  { %v4761_v59 = vpop.eup %4760  ;;  %v2553_v36 = vadd.f32 1.0, %v4759_v27 }
 0xb60   :  { %v2554_v24 = vadd.f32 1.0, %v4761_v59 }
 0xb61   :  { %4762 = vrcp.f32 %v2553_v36 }
 0xb62   :  { %4764 = vrcp.f32 %v2554_v24 }
 0xb6b   :  { %v4763_v16 = vpop.eup %4762 }
 0xb6c   :  { %v4765_v47 = vpop.eup %4764  ;;  %v2562_v33 = vmul.f32 %v4763_v16, %v2560_v13 }
 0xb6d   :  { %v2569_v15 = vmul.f32 %v4765_v47, %v2567_v25  ;;  %v2565_v29 = vsub.f32 1.0, %v4765_v47 }
 0xb6e   :  { %v2563_v26 = vadd.f32 %v2562_v33, %v5649_v55 }
 0xb70   :  { %4766 = vtanh.f32 %v2563_v26 }
 0xb7a   :  { %v4767_v39 = vpop.eup %4766 }
 0xb7b   :  { %v2566_v22 = vmul.f32 %v4767_v39, %v2565_v29 }
 0xb7d   :  { %v2570_v51 = vadd.f32 %v2569_v15, %v2566_v22 }
 0xb7f   :  { %v2572_v41 = vrot.slane %v2570_v51, 4  ;;  %v2744_v27 = vrot.slane %v2570_v51, 6 }
 0xb81   :  { %3603 = vmatmul.mubr.msk.f32.vlgmr.msra.gmra.mrb[26].mxu0 %vm353_vm5, %v2572_v41  ;;  %v5774_v34 = vadd.f32 %v3446_v61, %v2572_v41  ;;  %4049 = vmatmul.mubr.msk.f32.vlgmr.msra.gmra.mrb[30].mxu1 %vm353_vm5, %v2572_v41 }
 0xb82   :  { %4533 = vmatpush1.bf16.msra.mxu0 %v5521_v56  ;;  %4548 = vmatpush3.bf16.msra.mxu1 %v5542_v62 }
 0xb83   :  { %4535 = vmatprep.subr.bf16.mxu0 %v5527_v32  ;;  %4549 = vmatprep.subr.bf16.mxu1 %v4843_v48 }
 0xb84   :  { %2816 = vmatprep.mubr.f32.mxu0 %v4842_v7  ;;  %4067 = vmatprep.mubr.msk.f32.mxu1 %vm4844_vm1, %v4842_v7 }
 0xb86   :  { %4537 = vmatpush1.bf16.msra.mxu0 %v5554_v11  ;;  %4551 = vmatpush3.bf16.msra.mxu1 %v5573_v21 }
 0xb87   :  { %4539 = vmatprep.subr.bf16.mxu0 %v5558_v14  ;;  %4552 = vmatprep.subr.bf16.mxu1 %v4843_v48 }
 0xb8a   :  { %4541 = vmatpush1.bf16.msra.mxu0 %v5586_v28  ;;  %4554 = vmatpush3.bf16.msra.mxu1 %v5599_v31 }
 0xb8b   :  { %4543 = vmatprep.subr.bf16.mxu0 %v5590_v30  ;;  %4555 = vmatprep.subr.bf16.mxu1 %v4843_v48 }
 0xb8e   :  { %4545 = vmatpush1.bf16.msra.mxu0 %v5609_v18  ;;  %4557 = vmatpush3.bf16.msra.mxu1 %v5613_v19 }
 0xb8f   :  { %4559 = vmatprep.subr.bf16.mxu0 %v5473_v1  ;;  %4574 = vmatprep.subr.bf16.mxu1 %v4843_v48 }
 0xc54   :  { %v2641_v55 = vpop.f32.mrb[26].mxu0  ;;  %v2712_v43 = vpop.f32.mrb[30].mxu1 }
 0xc55   :  { %v2642_v54 = vadd.f32 %v2641_v55, %v5699_v58  ;;  %v2643_v35 = vpop.f32.mrb[27].mxu0  ;;  %v4050_v38 = vpop.f32.mrb[31].mxu1  ;;  %v2713_v52 = vadd.f32 %v2712_v43, %v5709_v63 }
 0xc56   :  { %v2644_v23 = vadd.f32 %v2643_v35, %v5702_v53 }
 0xc57   :  { %v2718_v6 = vrot.slane %v2642_v54, 2  ;;  %v2737_v45 = vrot.slane %v2713_v52, 2 }
 0xc58   :  { %v2719_v44 = vrot.slane %v2644_v23, 2 }
 0xc59   :  { %v2722_v12 = vadd.f32 %v2718_v6, %v5677_v17 }
 0xc5a   :  { %v2723_v57 = vadd.f32 %v2719_v44, %v5696_v60 }
 0xc5b   :  { %v3605_v2 = vmul.f32 -1.442695, %v2722_v12 }
 0xc5c   :  { %v3606_v5 = vmul.f32 -1.442695, %v2723_v57 }
 0xc5d   :  { %4768 = vpow2.f32 %v3605_v2 }
 0xc5e   :  { %4770 = vpow2.f32 %v3606_v5 }
 0xc67   :  { %v4769_v10 = vpop.eup %4768 }
 0xc68   :  { %v4771_v4 = vpop.eup %4770  ;;  %v2730_v50 = vadd.f32 1.0, %v4769_v10 }
 0xc69   :  { %v2731_v9 = vadd.f32 1.0, %v4771_v4 }
 0xc6a   :  { %4772 = vrcp.f32 %v2730_v50 }
 0xc6b   :  { %4774 = vrcp.f32 %v2731_v9 }
 0xc74   :  { %v4773_v8 = vpop.eup %4772 }
 0xc75   :  { %v4775_v59 = vpop.eup %4774  ;;  %v2739_v36 = vmul.f32 %v4773_v8, %v2737_v45 }
 0xc76   :  { %v2746_v17 = vmul.f32 %v4775_v59, %v2744_v27  ;;  %v2742_v24 = vsub.f32 1.0, %v4775_v59 }
 0xc77   :  { %v2740_v60 = vadd.f32 %v2739_v36, %v5653_v49 }
 0xc79   :  { %4776 = vtanh.f32 %v2740_v60 }
 0xc83   :  { %v4777_v40 = vpop.eup %4776 }
 0xc84   :  { %v2743_v13 = vmul.f32 %v4777_v40, %v2742_v24 }
 0xc86   :  { %v2747_v16 = vadd.f32 %v2746_v17, %v2743_v13 }
 0xc88   :  { %v2749_v25 = vrot.slane %v2747_v16, 6 }
 0xc8a   :  { %3607 = vmatmul.mubr.msk.f32.vlgmr.msra.gmra.mrb[28].mxu0 %vm353_vm5, %v2749_v25  ;;  %4068 = vmatmul.mubr.msk.f32.vlgmr.msra.gmra.mrb[32].mxu1 %vm353_vm5, %v2749_v25  ;;  %v3449_v4 = vadd.f32 %v5774_v34, %v2749_v25 }
 0xc8b   :  { %4561 = vmatpush1.bf16.msra.mxu0 %v5521_v56  ;;  %4576 = vmatpush3.bf16.msra.mxu1 %v5542_v62 }
 0xc8c   :  { %4563 = vmatprep.subr.bf16.mxu0 %v5527_v32  ;;  %4577 = vmatprep.subr.bf16.mxu1 %v4843_v48 }
 0xc8d   :  { %2982 = vmatprep.mubr.f32.mxu0 %v4842_v7  ;;  %4086 = vmatprep.mubr.msk.f32.mxu1 %vm4844_vm1, %v4842_v7 }
 0xc8f   :  { %4565 = vmatpush1.bf16.msra.mxu0 %v5554_v11  ;;  %4579 = vmatpush3.bf16.msra.mxu1 %v5573_v21 }
 0xc90   :  { %4567 = vmatprep.subr.bf16.mxu0 %v5558_v14  ;;  %4580 = vmatprep.subr.bf16.mxu1 %v4843_v48 }
 0xc93   :  { %4569 = vmatpush1.bf16.msra.mxu0 %v5586_v28  ;;  %4582 = vmatpush3.bf16.msra.mxu1 %v5599_v31 }
 0xc94   :  { %4571 = vmatprep.subr.bf16.mxu0 %v5590_v30  ;;  %4583 = vmatprep.subr.bf16.mxu1 %v4843_v48 }
 0xc97   :  { %4573 = vmatpush1.bf16.msra.mxu0 %v5609_v18  ;;  %4585 = vmatpush3.bf16.msra.mxu1 %v5613_v19 }
 0xc98   :  { %4587 = vmatprep.subr.bf16.mxu0 %v5473_v1  ;;  %4602 = vmatprep.subr.bf16.mxu1 %v4843_v48 }
 0xd5d   :  { %v2818_v49 = vpop.f32.mrb[28].mxu0  ;;  %v2889_v47 = vpop.f32.mrb[32].mxu1 }
 0xd5e   :  { %v2819_v33 = vadd.f32 %v2818_v49, %v5699_v58  ;;  %v2820_v15 = vpop.f32.mrb[29].mxu0  ;;  %v4069_v26 = vpop.f32.mrb[33].mxu1  ;;  %v2890_v35 = vadd.f32 %v2889_v47, %v5709_v63 }
 0xd5f   :  { %v2821_v29 = vadd.f32 %v2820_v15, %v5702_v53 }
 0xd60   :  { %v2893_v39 = vadd.f32 %v2819_v33, %v5657_v42 }
 0xd61   :  { %v2894_v51 = vadd.f32 %v2821_v29, %v5665_v0 }
 0xd62   :  { %v3609_v22 = vmul.f32 -1.442695, %v2893_v39 }
 0xd63   :  { %v3610_v61 = vmul.f32 -1.442695, %v2894_v51 }
 0xd64   :  { %4778 = vpow2.f32 %v3609_v22 }
 0xd65   :  { %4780 = vpow2.f32 %v3610_v61 }
 0xd6e   :  { %v4779_v41 = vpop.eup %4778 }
 0xd6f   :  { %v2901_v55 = vadd.f32 1.0, %v4779_v41  ;;  %v4781_v43 = vpop.eup %4780 }
 0xd70   :  { %v2902_v54 = vadd.f32 1.0, %v4781_v43 }
 0xd71   :  { %4782 = vrcp.f32 %v2901_v55 }
 0xd72   :  { %4784 = vrcp.f32 %v2902_v54 }
 0xd7b   :  { %v4783_v38 = vpop.eup %4782 }
 0xd7c   :  { %v2907_v23 = vmul.f32 %v4783_v38, %v2890_v35  ;;  %v4785_v44 = vpop.eup %4784 }
 0xd7d   :  { %v2910_v12 = vsub.f32 1.0, %v4785_v44  ;;  %v2913_v5 = vmul.f32 %v4785_v44, %v2749_v25 }
 0xd7e   :  { %v2908_v6 = vadd.f32 %v2907_v23, %v5661_v37 }
 0xd80   :  { %4786 = vtanh.f32 %v2908_v6 }
 0xd8a   :  { %v4787_v57 = vpop.eup %4786 }
 0xd8b   :  { %v2911_v2 = vmul.f32 %v4787_v57, %v2910_v12 }
 0xd8d   :  { %v2914_v10 = vadd.f32 %v2913_v5, %v2911_v2 }
 0xd8f   :  { %3611 = vmatmul.mubr.msk.f32.vlgmr.msra.gmra.mrb[30].mxu0 %vm353_vm5, %v2914_v10  ;;  %4087 = vmatmul.mubr.msk.f32.vlgmr.msra.gmra.mrb[34].mxu1 %vm353_vm5, %v2914_v10  ;;  %v3450_v50 = vadd.f32 %v3449_v4, %v2914_v10  ;;  %v3087_v15 = vrot.slane %v2914_v10, 6 }
 0xd90   :  { %4589 = vmatpush1.bf16.msra.mxu0 %v5521_v56  ;;  %4604 = vmatpush3.bf16.msra.mxu1 %v5542_v62 }
 0xd91   :  { %4591 = vmatprep.subr.bf16.mxu0 %v5527_v32  ;;  %4605 = vmatprep.subr.bf16.mxu1 %v4843_v48 }
 0xd92   :  { %3159 = vmatprep.mubr.f32.mxu0 %v4842_v7  ;;  %4105 = vmatprep.mubr.msk.f32.mxu1 %vm4844_vm1, %v4842_v7 }
 0xd94   :  { %4593 = vmatpush1.bf16.msra.mxu0 %v5554_v11  ;;  %4607 = vmatpush3.bf16.msra.mxu1 %v5573_v21 }
 0xd95   :  { %4595 = vmatprep.subr.bf16.mxu0 %v5558_v14  ;;  %4608 = vmatprep.subr.bf16.mxu1 %v4843_v48 }
 0xd98   :  { %4597 = vmatpush1.bf16.msra.mxu0 %v5586_v28  ;;  %4610 = vmatpush3.bf16.msra.mxu1 %v5599_v31 }
 0xd99   :  { %4599 = vmatprep.subr.bf16.mxu0 %v5590_v30  ;;  %4611 = vmatprep.subr.bf16.mxu1 %v4843_v48 }
 0xd9c   :  { %4601 = vmatpush1.bf16.msra.mxu0 %v5609_v18  ;;  %4613 = vmatpush3.bf16.msra.mxu1 %v5613_v19 }
 0xd9d   :  { %4615 = vmatprep.subr.bf16.mxu0 %v5473_v1  ;;  %4630 = vmatprep.subr.bf16.mxu1 %v4843_v48 }
 0xe62   :  { %v2984_v34 = vpop.f32.mrb[30].mxu0  ;;  %v3055_v9 = vpop.f32.mrb[34].mxu1 }
 0xe63   :  { %v2985_v52 = vadd.f32 %v2984_v34, %v5699_v58  ;;  %v2986_v45 = vpop.f32.mrb[31].mxu0  ;;  %v4088_v8 = vpop.f32.mrb[35].mxu1  ;;  %v3056_v49 = vadd.f32 %v3055_v9, %v5709_v63 }
 0xe64   :  { %v2987_v27 = vadd.f32 %v2986_v45, %v5702_v53 }
 0xe65   :  { %v3061_v59 = vrot.slane %v2985_v52, 6  ;;  %v3080_v47 = vrot.slane %v3056_v49, 6 }
 0xe66   :  { %v3062_v36 = vrot.slane %v2987_v27, 6  ;;  %v3459_v27 = vld [vmem:[%s5942_s9] sm:$0xff] }
 0xe67   :  { %v3065_v17 = vadd.f32 %v3061_v59, %v5669_v3  ;;  %v3461_v59 = vld [vmem:[%s5942_s9 + $0x10] sm:$0xff] }
 0xe68   :  { %v3066_v60 = vadd.f32 %v3062_v36, %v5685_v20 }
 0xe69   :  { %v3613_v24 = vmul.f32 -1.442695, %v3065_v17  ;;  %v3462_v17 = vld [vmem:[%s5942_s9 + $0x18] sm:$0xff] }
 0xe6a   :  { %v3614_v40 = vmul.f32 -1.442695, %v3066_v60  ;;  %v4646_v60 = vpack.c.bf16 %v3462_v17, %v3461_v59 }
 0xe6b   :  { %4788 = vpow2.f32 %v3613_v24  ;;  %v3464_v24 = vld [vmem:[%s5942_s9 + $0x28] sm:$0xff] }
 0xe6c   :  { %4790 = vpow2.f32 %v3614_v40 }
 0xe75   :  { %v4789_v1 = vpop.eup %4788 }
 0xe76   :  { %v4791_v13 = vpop.eup %4790  ;;  %v3073_v16 = vadd.f32 1.0, %v4789_v1  ;;  %v3465_v1 = vld [vmem:[%s5942_s9 + $0x30] sm:$0xff] }
 0xe77   :  { %v3074_v25 = vadd.f32 1.0, %v4791_v13  ;;  %v3466_v13 = vld [vmem:[%s5942_s9 + $0x38] sm:$0xff] }
 0xe78   :  { %4792 = vrcp.f32 %v3073_v16  ;;  %v4652_v16 = vpack.c.bf16 %v3466_v13, %v3465_v1 }
 0xe79   :  { %4794 = vrcp.f32 %v3074_v25 }
 0xe82   :  { %v4793_v33 = vpop.eup %4792 }
 0xe83   :  { %v4795_v26 = vpop.eup %4794  ;;  %v3082_v29 = vmul.f32 %v4793_v33, %v3080_v47 }
 0xe84   :  { %v3089_v39 = vmul.f32 %v4795_v26, %v3087_v15  ;;  %v3085_v51 = vsub.f32 1.0, %v4795_v26 }
 0xe85   :  { %v3083_v22 = vadd.f32 %v3082_v29, %v5681_v46 }
 0xe87   :  { %4796 = vtanh.f32 %v3083_v22 }
 0xe91   :  { %v4797_v61 = vpop.eup %4796 }
 0xe92   :  { %v3086_v41 = vmul.f32 %v4797_v61, %v3085_v51 }
 0xe94   :  { %v3090_v55 = vadd.f32 %v3089_v39, %v3086_v41 }
 0xe96   :  { %v3092_v43 = vrot.slane %v3090_v55, 2  ;;  %v3264_v5 = vrot.slane %v3090_v55, 6 }
 0xe98   :  { %3615 = vmatmul.mubr.msk.f32.vlgmr.msra.gmra.mrb[32].mxu0 %vm353_vm5, %v3092_v43  ;;  %4106 = vmatmul.mubr.msk.f32.vlgmr.msra.gmra.mrb[36].mxu1 %vm353_vm5, %v3092_v43  ;;  %v3452_v54 = vadd.f32 %v3450_v50, %v3092_v43 }
 0xe99   :  { %4617 = vmatpush1.bf16.msra.mxu0 %v5521_v56  ;;  %4632 = vmatpush3.bf16.msra.mxu1 %v5542_v62 }
 0xe9a   :  { %4619 = vmatprep.subr.bf16.mxu0 %v5527_v32  ;;  %4633 = vmatprep.subr.bf16.mxu1 %v4843_v48 }
 0xe9b   :  { %3336 = vmatprep.mubr.f32.mxu0 %v4842_v7  ;;  %4124 = vmatprep.mubr.msk.f32.mxu1 %vm4844_vm1, %v4842_v7 }
 0xe9d   :  { %4621 = vmatpush1.bf16.msra.mxu0 %v5554_v11  ;;  %4635 = vmatpush3.bf16.msra.mxu1 %v5573_v21 }
 0xe9e   :  { %4623 = vmatprep.subr.bf16.mxu0 %v5558_v14  ;;  %4636 = vmatprep.subr.bf16.mxu1 %v4843_v48 }
 0xea1   :  { %4625 = vmatpush1.bf16.msra.mxu0 %v5586_v28  ;;  %4638 = vmatpush3.bf16.msra.mxu1 %v5599_v31 }
 0xea2   :  { %4627 = vmatprep.subr.bf16.mxu0 %v5590_v30  ;;  %4639 = vmatprep.subr.bf16.mxu1 %v4843_v48 }
 0xea5   :  { %4629 = vmatpush1.bf16.msra.mxu0 %v5609_v18  ;;  %4641 = vmatpush3.bf16.msra.mxu1 %v5613_v19 }
 0xea6   :  { %4642 = vmatprep.subr.bf16.mxu0 %v4843_v48 }
 0xf6b   :  { %v3161_v56 = vpop.f32.mrb[32].mxu0  ;;  %v3232_v32 = vpop.f32.mrb[36].mxu1 }
 0xf6c   :  { %v3162_v62 = vadd.f32 %v3161_v56, %v5699_v58  ;;  %v3163_v11 = vpop.f32.mrb[33].mxu0  ;;  %v4107_v14 = vpop.f32.mrb[37].mxu1  ;;  %v3233_v12 = vadd.f32 %v3232_v32, %v5709_v63 }
 0xf6d   :  { %v3164_v21 = vadd.f32 %v3163_v11, %v5702_v53 }
 0xf6e   :  { %v3238_v28 = vrot.slane %v3162_v62, 4  ;;  %v3257_v57 = vrot.slane %v3233_v12, 4 }
 0xf6f   :  { %v3239_v31 = vrot.slane %v3164_v21, 4 }
 0xf70   :  { %v3242_v30 = vadd.f32 %v3238_v28, %v5657_v42 }
 0xf71   :  { %v3243_v35 = vadd.f32 %v3239_v31, %v5665_v0 }
 0xf72   :  { %v3617_v38 = vmul.f32 -1.442695, %v3242_v30 }
 0xf73   :  { %v3618_v18 = vmul.f32 -1.442695, %v3243_v35 }
 0xf74   :  { %4798 = vpow2.f32 %v3617_v38 }
 0xf75   :  { %4800 = vpow2.f32 %v3618_v18 }
 0xf7e   :  { %v4799_v19 = vpop.eup %4798 }
 0xf7f   :  { %v4801_v23 = vpop.eup %4800  ;;  %v3250_v6 = vadd.f32 1.0, %v4799_v19 }
 0xf80   :  { %v3251_v44 = vadd.f32 1.0, %v4801_v23 }
 0xf81   :  { %4802 = vrcp.f32 %v3250_v6 }
 0xf82   :  { %4804 = vrcp.f32 %v3251_v44 }
 0xf8b   :  { %v4803_v2 = vpop.eup %4802 }
 0xf8c   :  { %v4805_v10 = vpop.eup %4804  ;;  %v3259_v4 = vmul.f32 %v4803_v2, %v3257_v57 }
 0xf8d   :  { %v3266_v42 = vmul.f32 %v4805_v10, %v3264_v5  ;;  %v3262_v50 = vsub.f32 1.0, %v4805_v10 }
 0xf8e   :  { %v3260_v0 = vadd.f32 %v3259_v4, %v5661_v37  ;;  %v3460_v37 = vld [vmem:[%s5942_s9 + $0x8] sm:$0xff] }
 0xf8f   :  { %v4643_v36 = vpack.c.bf16 %v3460_v37, %v3459_v27 }
 0xf90   :  { %4806 = vtanh.f32 %v3260_v0 }
 0xf9a   :  { %v4807_v34 = vpop.eup %4806 }
 0xf9b   :  { %v3263_v9 = vmul.f32 %v4807_v34, %v3262_v50 }
 0xf9d   :  { %v3267_v52 = vadd.f32 %v3266_v42, %v3263_v9 }
 0xf9f   :  { %v3269_v45 = vrot.slane %v3267_v52, 4  ;;  %v3441_v32 = vrot.slane %v3267_v52, 6 }
 0xfa1   :  { %3619 = vmatmul.mubr.msk.f32.vlgmr.msra.gmra.mrb[34].mxu0 %vm353_vm5, %v3269_v45  ;;  %4125 = vmatmul.mubr.msk.f32.vlgmr.msra.gmra.mrb[38].mxu1 %vm353_vm5, %v3269_v45  ;;  %v3454_v8 = vadd.f32 %v3452_v54, %v3269_v45 }
 0xfa2   :  { %4143 = vmatprep.mubr.msk.f32.mxu0 %vm4844_vm1, %v4842_v7  ;;  %4644 = vmatpush3.bf16.msra.mxu0 %v4643_v36  ;;  %v3463_v7 = vld [vmem:[%s5942_s9 + $0x20] sm:$0xff]  ;;  %s4845_s9 = smov [#allocation2]  }
 0xfa3   :  { %4645 = vmatprep.subr.bf16.mxu0 %v4843_v48  ;;  %v4649_v40 = vpack.c.bf16 %v3464_v24, %v3463_v7  ;;  %s3547_s16 = sshll.u32 %s4845_s9, 4  ;;  %s3548_s16 = int_to_ptr.vmem [resolvable:$true] %s3547_s16 }
 0xfa4   :  { %s4818_s17 = scalar_lea.vmem %s3548_s16, 32  ;;  %p4823_p1 = scmp.lt.s32.totalorder %s3548_s16, %s3548_s16 }
 0xfa5   :  { %p4819_p0 = scmp.ne.s32.totalorder %s3548_s16, %s4818_s17  ;;  %p4824_p2 = scmp.lt.s32.totalorder %s4818_s17, %s4818_s17 }
 0xfa6   :  { %4647 = vmatpush3.bf16.msra.mxu0 %v4646_v60 }
 0xfa7   :  { %4648 = vmatprep.subr.bf16.mxu0 %v4843_v48  ;;  %p4825_p3 = por %p4824_p2, %p4823_p1 }
 0xfa9   :  { %p4826_p4 = pnand %p4825_p3, %p4819_p0 }
 0xfaa   :  { %4650 = vmatpush3.bf16.msra.mxu0 %v4649_v40 }
 0xfab   :  { %4651 = vmatprep.subr.bf16.mxu0 %v4843_v48 }
 0xfae   :  { %4653 = vmatpush3.bf16.msra.mxu0 %v4652_v16 }
0x1074   :  { %v3338_v25 = vpop.f32.mrb[34].mxu0  ;;  %v3409_v49 = vpop.f32.mrb[38].mxu1 }
0x1075   :  { %v3339_v47 = vadd.f32 %v3338_v25, %v5699_v58  ;;  %v3340_v33 = vpop.f32.mrb[35].mxu0  ;;  %v4126_v15 = vpop.f32.mrb[39].mxu1  ;;  %v3410_v58 = vadd.f32 %v3409_v49, %v5709_v63 }
0x1076   :  { %v3341_v26 = vadd.f32 %v3340_v33, %v5702_v53 }
0x1077   :  { %v3415_v29 = vrot.slane %v3339_v47, 2  ;;  %v3434_v56 = vrot.slane %v3410_v58, 2 }
0x1078   :  { %v3416_v39 = vrot.slane %v3341_v26, 2 }
0x1079   :  { %v3419_v22 = vadd.f32 %v3415_v29, %v5669_v3 }
0x107a   :  { %v3420_v51 = vadd.f32 %v3416_v39, %v5685_v20 }
0x107b   :  { %v3621_v61 = vmul.f32 -1.442695, %v3419_v22 }
0x107c   :  { %v3622_v41 = vmul.f32 -1.442695, %v3420_v51 }
0x107d   :  { %4808 = vpow2.f32 %v3621_v61 }
0x107e   :  { %4810 = vpow2.f32 %v3622_v41 }
0x1087   :  { %v4809_v48 = vpop.eup %4808 }
0x1088   :  { %v4811_v55 = vpop.eup %4810  ;;  %v3427_v43 = vadd.f32 1.0, %v4809_v48 }
0x1089   :  { %v3428_v54 = vadd.f32 1.0, %v4811_v55 }
0x108a   :  { %4812 = vrcp.f32 %v3427_v43 }
0x108b   :  { %4814 = vrcp.f32 %v3428_v54 }
0x1094   :  { %v4813_v53 = vpop.eup %4812 }
0x1095   :  { %v4815_v62 = vpop.eup %4814  ;;  %v3436_v11 = vmul.f32 %v4813_v53, %v3434_v56 }
0x1096   :  { %v3443_v3 = vmul.f32 %v4815_v62, %v3441_v32  ;;  %v3439_v14 = vsub.f32 1.0, %v4815_v62 }
0x1097   :  { %v3437_v20 = vadd.f32 %v3436_v11, %v5681_v46 }
0x1099   :  { %4816 = vtanh.f32 %v3437_v20 }
0x10a3   :  { %v4817_v21 = vpop.eup %4816 }
0x10a4   :  { %v3440_v28 = vmul.f32 %v4817_v21, %v3439_v14 }
0x10a6   :  { %v3444_v31 = vadd.f32 %v3443_v3, %v3440_v28 }
0x10a8   :  { %v3456_v30 = vrot.slane %v3444_v31, 6 }
0x10aa   :  { %v3458_v35 = vadd.f32 %v3456_v30, %v3454_v8 }
0x10ac   :  { %4144 = vmatmul.mubr.msk.f32.vlgmr.msra.gmra.mrb[36].mxu0 %vm353_vm5, %v3458_v35 }
0x117f   :  { %v3536_v63 = vpop.f32.mrb[36].mxu0 }
0x1180   :  { %3540 = vst [vmem:[#allocation2] sm:$0x3] %v3536_v63  ;;  %v4145_v38 = vpop.f32.mrb[37].mxu0 }
0x1181   :  { %4829 = shalt.err (!%p4826_p4)
}
0x1182   :  { %s4830_s20 = scalar_lea.hbm %s5943_s10, 32 }
0x1183   :  { %p4831_p5 = scmp.ne.s32.totalorder %s5943_s10, %s4830_s20  ;;  %p4834_p6 = scmp.lt.u32.totalorder %s4830_s20, %s5943_s10 }
0x1185   :  { %p4836_p7 = pnand %p4834_p6, %p4831_p5 }
0x1187   :  { %4839 = shalt.err (!%p4836_p7)
}
0x1188   :  { %3550 = dma.vmem_to_hbm [thread:$0]  %s3548_s16, 32, %s5943_s10, [#allocation3]  }
0x1189   :  { %4840 = dma.done.wait [#allocation3], 32  }
0x118a   :  { %4841 = vsyncadd [#allocation3], 4294967264 }
0x118b   :  { %3554 = vsyncpa [#allocation3], 1 }

</bundles_post_ra>
